<compile_context>
chip_gen: v6e
topology: v6e:2x2x1
jax: 0.10.0
libtpu: 0.0.40
codegen_flags: <defaults>
</compile_context>

<pallas_src>
import jax
import jax.numpy as jnp
from jax.experimental import pallas as pl
from jax.experimental.pallas import tpu as pltpu

BN_EPS = 1e-5
NORM_EPS = 1e-12
LANE = 128

_PARAM_ORDER = (
    "w_rel1", "w_root1", "b_rel1", "bn1_g", "bn1_b",
    "w_rel2", "b_rel2", "bn2_g", "bn2_b",
    "w_root2_lin_a", "w_lin_b", "b_lin",
)


def _round_up(x, m):
    return (x + m - 1) // m * m


def _pad_to(a, shape):
    return jnp.pad(a, [(0, t - s) for s, t in zip(a.shape, shape)])


def _l2_normalize(h):
    # F.normalize(h, p=2, dim=-1) == h * rsqrt(max(sum(h^2), eps^2))   (rsqrt -> EUP slot)
    sumsq = jnp.sum(h * h, axis=-1, keepdims=True)
    return h * jax.lax.rsqrt(jnp.maximum(sumsq, NORM_EPS * NORM_EPS))


def gnn_emb_kernel(
    x_ref, adj_ref,
    w_rel1_ref, w_root1_ref, b_rel1_ref, bn1_g_ref, bn1_b_ref,
    w_rel2_ref, b_rel2_ref, bn2_g_ref, bn2_b_ref,
    w_root2_lin_a_ref, w_lin_b_ref, b_lin_ref,
    out_ref,
):
    bt, n, _ = x_ref.shape
    op = out_ref.shape[-1]                       # padded Op (multiple of 128)

    adj = adj_ref[...]                           # bf16 {0,1}; never cast to a full f32 copy
    x_bf = x_ref[...].astype(jnp.bfloat16)       # bf16 LHS for the MXU

    # degree with f32 accumulation (exact: adj entries are 0/1); approx reciprocal -> EUP
    deg = jnp.sum(adj, axis=-1, dtype=jnp.float32, keepdims=True)
    inv_deg = pl.reciprocal(jnp.maximum(deg, 1.0), approx=True)

    def dense(a_bf16, w_ref):
        # (Bt*N, K) @ (K, M): fold batch*nodes into one fat bf16 MXU matmul, f32 accumulate.
        k = a_bf16.shape[-1]
        m = w_ref.shape[-1]
        return jnp.dot(a_bf16.reshape(bt * n, k), w_ref[...],
                       preferred_element_type=jnp.float32).reshape(bt, n, m)

    # ---- DenseSAGEConv 1:  L2norm( (adj@x/deg) @ Wrel1 + brel1 + x @ Wroot1 ) ----
    agg = jnp.einsum("bij,bjf->bif", adj, x_bf,
                     preferred_element_type=jnp.float32) * inv_deg
    h1 = (dense(agg.astype(jnp.bfloat16), w_rel1_ref) + b_rel1_ref[...]
          + dense(x_bf, w_root1_ref))
    h1 = _l2_normalize(h1)                       # padded cols of h1 are exactly 0 (zero W cols/bias)
    # eval-mode BN pre-folded to scale/shift; sigmoid; dropout = identity in eval mode
    x1 = jax.nn.sigmoid(h1 * bn1_g_ref[...] + bn1_b_ref[...])        # (Bt, N, Hp)
    # NOTE: padded lanes of x1 are sigmoid(0) = 0.5 (NOT 0). Correctness relies on
    # w_rel2 / w_root2_lin_a having zero *rows* at those positions (see prepare_params).
    x1_bf = x1.astype(jnp.bfloat16)

    # ---- DenseSAGEConv 2 + first half of the final Linear (shared LHS x1 -> one matmul) ----
    agg2 = jnp.einsum("bij,bjf->bif", adj, x1_bf,
                      preferred_element_type=jnp.float32) * inv_deg
    t = dense(x1_bf, w_root2_lin_a_ref)          # (Bt, N, 2*Op): [x1 @ Wroot2 | x1 @ Wlin_a]
    h2 = dense(agg2.astype(jnp.bfloat16), w_rel2_ref) + b_rel2_ref[...] + t[..., :op]
    h2 = _l2_normalize(h2)
    x2 = jnp.maximum(h2 * bn2_g_ref[...] + bn2_b_ref[...], 0.0)      # (Bt, N, Op), pad cols = 0

    # ---- final Linear over concat([x1, x2]): lin_a half already sits in `t` ----
    out = t[..., op:] + dense(x2.astype(jnp.bfloat16), w_lin_b_ref) + b_lin_ref[...]
    out_ref[...] = jnp.maximum(out, 0.0).astype(out_ref.dtype)


def prepare_params(p):
    """Host-side layout work: transpose weights to (in, out), pad feature dims to the 128-lane
    boundary, cast weights to bf16, merge w_root2 with the x1-half of w_lin (shared LHS), split
    w_lin (concat -> two accumulating matmuls), and fold the BatchNorm running statistics into
    a per-channel scale/shift.  Zero padding keeps the math exact: padded h1/h2 columns are
    exactly 0 and padded weight *rows* are 0, so padded lanes (incl. x1's sigmoid(0)=0.5 lanes)
    never leak into real outputs or the L2 norms."""
    h, fin = p["w_rel1"].shape
    o = p["w_rel2"].shape[0]
    hp, op = _round_up(h, LANE), _round_up(o, LANE)
    wdt = jnp.bfloat16

    def bn_fold(g, b, mean, var):
        scale = g / jnp.sqrt(var + BN_EPS)
        shift = b - mean * scale
        return scale, shift

    s1, t1 = bn_fold(p["bn1_g"], p["bn1_b"], p["bn1_mean"], p["bn1_var"])
    s2, t2 = bn_fold(p["bn2_g"], p["bn2_b"], p["bn2_mean"], p["bn2_var"])

    wl = p["w_lin"]                              # (O, H + O)
    w_root2_lin_a = jnp.concatenate(
        [_pad_to(p["w_root2"].T, (hp, op)), _pad_to(wl[:, :h].T, (hp, op))], axis=1)

    prepared = {
        "w_rel1":  _pad_to(p["w_rel1"].T,  (fin, hp)).astype(wdt),
        "w_root1": _pad_to(p["w_root1"].T, (fin, hp)).astype(wdt),
        "b_rel1":  _pad_to(p["b_rel1"],    (1, hp)),
        "bn1_g":   _pad_to(s1,             (1, hp)),
        "bn1_b":   _pad_to(t1,             (1, hp)),
        "w_rel2":  _pad_to(p["w_rel2"].T,  (hp, op)).astype(wdt),
        "b_rel2":  _pad_to(p["b_rel2"],    (1, op)),
        "bn2_g":   _pad_to(s2,             (1, op)),
        "bn2_b":   _pad_to(t2,             (1, op)),
        "w_root2_lin_a": w_root2_lin_a.astype(wdt),   # (Hp, 2*Op), zero rows above h
        "w_lin_b": _pad_to(wl[:, h:].T,    (op, op)).astype(wdt),
        "b_lin":   _pad_to(p["b_lin"],     (1, op)),
    }
    return prepared, h, o, hp, op


def _vmem_plan():
    """(block_b selection budget, vmem_limit cap) chosen per TPU generation."""
    cap = 64 * 1024 * 1024
    try:
        cap = int(getattr(pltpu.get_tpu_info(), "vmem_capacity_bytes", cap))
    except Exception:
        pass
    if cap >= 100 * 1024 * 1024:                       # v5e / v6e: 128 MiB physical VMEM
        return 56 * 1024 * 1024, 100 * 1024 * 1024
    return 20 * 1024 * 1024, 48 * 1024 * 1024          # v7x: 64 MiB per TensorCore


def gnn_emb_forward(x, adj, params, *, block_b=None, vmem_budget_bytes=None,
                    out_dtype=jnp.bfloat16):
    B, N, Fin = x.shape
    prepared, H, O, Hp, Op = prepare_params(params)

    # adj holds only {0,1} -> bf16 is exact and halves the dominant HBM stream (N^2 per graph).
    adj_bf16 = adj.astype(jnp.bfloat16)
    out_isz = jnp.dtype(out_dtype).itemsize

    budget, limit_cap = _vmem_plan()
    if vmem_budget_bytes is not None:
        budget = vmem_budget_bytes

    weight_bytes = sum(int(v.size) * v.dtype.itemsize for v in prepared.values())

    def vmem_estimate(bt):
        io = bt * N * (Fin * 4 + N * 2 + Op * out_isz)          # pipelined x / adj / out blocks
        act = bt * N * (8 * Fin + 18 * Hp + 24 * Op + 2 * N)    # in-kernel f32/bf16 working set
        return 2 * io + 2 * weight_bytes + act                  # conservative (double-buffered)

    # Largest batch tile (graphs per grid step) under the VMEM budget, while keeping the grid
    # at >= 2 steps so both v7x TensorCores get work (costs one extra ~0.35us step elsewhere).
    if block_b is None:
        block_b = 1
        min_steps = 2 if B >= 2 else 1
        if N % 8 == 0:          # Bt*N fold wants sublane-aligned N; otherwise stay per-graph
            for bt in range(max(1, B // min_steps), 0, -1):
                if B % bt == 0 and vmem_estimate(bt) <= budget:
                    block_b = bt
                    break

    grid = (B // block_b,)
    vmem_limit = int(min(limit_cap, max(32 * 1024 * 1024, 2 * vmem_estimate(block_b))))

    def make_call(weight_pipeline_mode):
        weight_specs = []
        for k in _PARAM_ORDER:
            if weight_pipeline_mode is None:
                weight_specs.append(pl.BlockSpec(prepared[k].shape, lambda g: (0, 0)))
            else:
                weight_specs.append(pl.BlockSpec(prepared[k].shape, lambda g: (0, 0),
                                                 pipeline_mode=weight_pipeline_mode))
        in_specs = [
            pl.BlockSpec((block_b, N, Fin), lambda g: (g, 0, 0)),   # x (f32)
            pl.BlockSpec((block_b, N, N), lambda g: (g, 0, 0)),     # adj (bf16)
        ] + weight_specs
        out_specs = pl.BlockSpec((block_b, N, Op), lambda g: (g, 0, 0))  # lane-dense (Op%128==0)
        return pl.pallas_call(
            gnn_emb_kernel,
            out_shape=jax.ShapeDtypeStruct((B, N, Op), out_dtype),
            grid_spec=pltpu.PrefetchScalarGridSpec(
                num_scalar_prefetch=0,
                grid=grid,
                in_specs=in_specs,
                out_specs=out_specs,
            ),
            compiler_params=pltpu.CompilerParams(
                dimension_semantics=("parallel",),
                vmem_limit_bytes=vmem_limit,
            ),
        )

    args = (x, adj_bf16, *[prepared[k] for k in _PARAM_ORDER])
    try:
        # Constant operands never change across grid steps -> single-buffer them (halves the
        # VMEM they reserve, freeing budget for a larger block_b).
        out_padded = jax.block_until_ready(make_call(pl.Buffered(1))(*args))
    except Exception:
        # Graceful fallback for JAX builds that reject pipeline_mode / buffer_count=1.
        out_padded = make_call(None)(*args)

    # Padded output columns are exactly 0; slice off the lane padding host-side.
    # TODO(synk): fuse this slice into the downstream consumer to avoid the extra pass entirely.
    return out_padded[..., :O]


def init_params(key, num_node_features, hidden_channels, out_channels):
    """Canonical (PyTorch-layout) parameters incl. BN running stats; prepare_params() does the
    TPU layout work."""
    ks = jax.random.split(key, 16)
    s = 0.1
    return {
        # DenseSAGEConv 1: lin_rel (with bias), lin_root (no bias)
        "w_rel1": s * jax.random.normal(ks[0], (hidden_channels, num_node_features), jnp.float32),
        "b_rel1": s * jax.random.normal(ks[1], (1, hidden_channels), jnp.float32),
        "w_root1": s * jax.random.normal(ks[2], (hidden_channels, num_node_features), jnp.float32),
        # BatchNorm1d(hidden): affine params + running statistics (eval mode)
        "bn1_g": 1.0 + 0.05 * jax.random.normal(ks[3], (1, hidden_channels), jnp.float32),
        "bn1_b": 0.05 * jax.random.normal(ks[4], (1, hidden_channels), jnp.float32),
        "bn1_mean": 0.05 * jax.random.normal(ks[5], (1, hidden_channels), jnp.float32),
        "bn1_var": 0.8 + 0.4 * jax.random.uniform(ks[6], (1, hidden_channels), jnp.float32),
        # DenseSAGEConv 2
        "w_rel2": s * jax.random.normal(ks[7], (out_channels, hidden_channels), jnp.float32),
        "b_rel2": s * jax.random.normal(ks[8], (1, out_channels), jnp.float32),
        "w_root2": s * jax.random.normal(ks[9], (out_channels, hidden_channels), jnp.float32),
        # BatchNorm1d(out)
        "bn2_g": 1.0 + 0.05 * jax.random.normal(ks[10], (1, out_channels), jnp.float32),
        "bn2_b": 0.05 * jax.random.normal(ks[11], (1, out_channels), jnp.float32),
        "bn2_mean": 0.05 * jax.random.normal(ks[12], (1, out_channels), jnp.float32),
        "bn2_var": 0.8 + 0.4 * jax.random.uniform(ks[13], (1, out_channels), jnp.float32),
        # final Linear(hidden + out -> out)
        "w_lin": s * jax.random.normal(ks[14], (out_channels, hidden_channels + out_channels),
                                       jnp.float32),
        "b_lin": s * jax.random.normal(ks[15], (1, out_channels), jnp.float32),
    }


def gnn_emb_ref(x, adj, p):
    """Pure-JAX f32 reference (unpadded, PyTorch layout) for correctness checking."""
    deg = jnp.maximum(jnp.sum(adj, axis=-1, keepdims=True), 1.0)

    def norm(h):
        n = jnp.sqrt(jnp.sum(h * h, axis=-1, keepdims=True))
        return h / jnp.maximum(n, NORM_EPS)

    def bn(h, g, b, mean, var):
        return (h - mean) / jnp.sqrt(var + BN_EPS) * g + b

    h1 = norm(jnp.einsum("bij,bjf->bif", adj, x) / deg @ p["w_rel1"].T + p["b_rel1"]
              + x @ p["w_root1"].T)
    x1 = jax.nn.sigmoid(bn(h1, p["bn1_g"], p["bn1_b"], p["bn1_mean"], p["bn1_var"]))
    h2 = norm(jnp.einsum("bij,bjf->bif", adj, x1) / deg @ p["w_rel2"].T + p["b_rel2"]
              + x1 @ p["w_root2"].T)
    x2 = jnp.maximum(bn(h2, p["bn2_g"], p["bn2_b"], p["bn2_mean"], p["bn2_var"]), 0.0)
    cat = jnp.concatenate([x1, x2], axis=-1)
    return jnp.maximum(cat @ p["w_lin"].T + p["b_lin"], 0.0)


if __name__ == "__main__":
    B, N = 2, 16
    num_node_features, hidden_channels, out_channels = 4, 32, 32

    key = jax.random.PRNGKey(0)
    kx, kadj, kparams = jax.random.split(key, 3)

    x = jax.random.normal(kx, (B, N, num_node_features), jnp.float32)
    # symmetric dense adjacency with self-loops (values are exactly 0/1)
    a = (jax.random.uniform(kadj, (B, N, N)) > 0.5).astype(jnp.float32)
    adj = jnp.clip(a + jnp.transpose(a, (0, 2, 1)) + jnp.eye(N)[None], 0.0, 1.0)

    params = init_params(kparams, num_node_features, hidden_channels, out_channels)

    out = gnn_emb_forward(x, adj, params)
    out = jax.block_until_ready(out)

    ref = gnn_emb_ref(x, adj, params)
    assert out.shape == (B, N, out_channels), out.shape
    # tolerance covers bf16 matmul operands / bf16 output / approx-reciprocal / rsqrt and
    # the matmul-split reassociation (3 stacked bf16 layers -> ~1% worst-case relative error)
    assert jnp.allclose(out.astype(jnp.float32), ref, atol=2e-2, rtol=2e-2), \
        "mismatch vs JAX reference"

    print("KERNEL_OK")
</pallas_src>

<mosaic_0001>
module attributes {stable_mosaic.version = 11 : i64} {
  func.func @gnn_emb_kernel(%arg0: i32, %arg1: memref<1x16x4xf32, #tpu.memory_space<vmem>>, %arg2: memref<1x16x16xbf16, #tpu.memory_space<vmem>>, %arg3: memref<4x128xbf16, #tpu.memory_space<vmem>>, %arg4: memref<4x128xbf16, #tpu.memory_space<vmem>>, %arg5: memref<1x128xf32, #tpu.memory_space<vmem>>, %arg6: memref<1x128xf32, #tpu.memory_space<vmem>>, %arg7: memref<1x128xf32, #tpu.memory_space<vmem>>, %arg8: memref<128x128xbf16, #tpu.memory_space<vmem>>, %arg9: memref<1x128xf32, #tpu.memory_space<vmem>>, %arg10: memref<1x128xf32, #tpu.memory_space<vmem>>, %arg11: memref<1x128xf32, #tpu.memory_space<vmem>>, %arg12: memref<128x256xbf16, #tpu.memory_space<vmem>>, %arg13: memref<128x128xbf16, #tpu.memory_space<vmem>>, %arg14: memref<1x128xf32, #tpu.memory_space<vmem>>, %arg15: memref<1x16x128xbf16, #tpu.memory_space<vmem>>) attributes {dimension_semantics = [#tpu.dimension_semantics<parallel>], iteration_bounds = array<i64: 2>, scalar_prefetch = 0 : i64, scratch_operands = 0 : i64, tpu.core_type = #tpu.core_type<tc>, window_params = [{transform_indices = @transform_0, window_bounds = array<i64: 1, 16, 4>}, {transform_indices = @transform_1, window_bounds = array<i64: 1, 16, 16>}, {pipeline_mode = #tpu.pipeline_mode<synchronous>, transform_indices = @transform_2, window_bounds = array<i64: 4, 128>}, {pipeline_mode = #tpu.pipeline_mode<synchronous>, transform_indices = @transform_3, window_bounds = array<i64: 4, 128>}, {pipeline_mode = #tpu.pipeline_mode<synchronous>, transform_indices = @transform_4, window_bounds = array<i64: 1, 128>}, {pipeline_mode = #tpu.pipeline_mode<synchronous>, transform_indices = @transform_5, window_bounds = array<i64: 1, 128>}, {pipeline_mode = #tpu.pipeline_mode<synchronous>, transform_indices = @transform_6, window_bounds = array<i64: 1, 128>}, {pipeline_mode = #tpu.pipeline_mode<synchronous>, transform_indices = @transform_7, window_bounds = array<i64: 128, 128>}, {pipeline_mode = #tpu.pipeline_mode<synchronous>, transform_indices = @transform_8, window_bounds = array<i64: 1, 128>}, {pipeline_mode = #tpu.pipeline_mode<synchronous>, transform_indices = @transform_9, window_bounds = array<i64: 1, 128>}, {pipeline_mode = #tpu.pipeline_mode<synchronous>, transform_indices = @transform_10, window_bounds = array<i64: 1, 128>}, {pipeline_mode = #tpu.pipeline_mode<synchronous>, transform_indices = @transform_11, window_bounds = array<i64: 128, 256>}, {pipeline_mode = #tpu.pipeline_mode<synchronous>, transform_indices = @transform_12, window_bounds = array<i64: 128, 128>}, {pipeline_mode = #tpu.pipeline_mode<synchronous>, transform_indices = @transform_13, window_bounds = array<i64: 1, 128>}, {transform_indices = @transform_14, window_bounds = array<i64: 1, 16, 128>}]} {
    %c0 = arith.constant 0 : index
    %c0_0 = arith.constant 0 : index
    %c0_1 = arith.constant 0 : index
    %0 = vector.load %arg2[%c0, %c0_0, %c0_1] : memref<1x16x16xbf16, #tpu.memory_space<vmem>>, vector<1x16x16xbf16>
    %c0_2 = arith.constant 0 : index
    %c0_3 = arith.constant 0 : index
    %c0_4 = arith.constant 0 : index
    %1 = vector.load %arg1[%c0_2, %c0_3, %c0_4] : memref<1x16x4xf32, #tpu.memory_space<vmem>>, vector<1x16x4xf32>
    %2 = arith.truncf %1 : vector<1x16x4xf32> to vector<1x16x4xbf16>
    %3 = arith.extf %0 : vector<1x16x16xbf16> to vector<1x16x16xf32>
    %cst = arith.constant dense<0.000000e+00> : vector<1x16xf32>
    %4 = vector.multi_reduction <add>, %3, %cst [2] : vector<1x16x16xf32> to vector<1x16xf32>
    %5 = vector.shape_cast %4 : vector<1x16xf32> to vector<1x16x1xf32>
    %cst_5 = arith.constant 1.000000e+00 : f32
    %6 = vector.broadcast %cst_5 : f32 to vector<1x16x1xf32>
    %7 = arith.maximumf %5, %6 : vector<1x16x1xf32>
    %8 = tpu.reciprocal %7 {approx = true} : vector<1x16x1xf32> -> vector<1x16x1xf32>
    "tpu.trace_start"() <{level = 10 : i32, message = "bij,bjf->bif"}> : () -> ()
    %cst_6 = arith.constant dense<0.000000e+00> : vector<1x16x4xf32>
    %9 = tpu.matmul %0, %2, %cst_6 {dimension_numbers = #tpu.dot_dimension_numbers<[2], [1], [1], [2], [0, 0, 0, 1, 1, 2], [0], [0]>} : vector<1x16x16xbf16>, vector<1x16x4xbf16>, vector<1x16x4xf32> -> vector<1x16x4xf32>
    "tpu.trace_stop"() : () -> ()
    %10 = vector.broadcast %8 : vector<1x16x1xf32> to vector<1x16x4xf32>
    %11 = arith.mulf %9, %10 : vector<1x16x4xf32>
    %12 = arith.truncf %11 : vector<1x16x4xf32> to vector<1x16x4xbf16>
    %13 = vector.shape_cast %12 : vector<1x16x4xbf16> to vector<16x4xbf16>
    %c0_7 = arith.constant 0 : index
    %c0_8 = arith.constant 0 : index
    %14 = vector.load %arg3[%c0_7, %c0_8] : memref<4x128xbf16, #tpu.memory_space<vmem>>, vector<4x128xbf16>
    %cst_9 = arith.constant dense<0.000000e+00> : vector<16x128xf32>
    %15 = tpu.matmul %13, %14, %cst_9 {dimension_numbers = #tpu.dot_dimension_numbers<[1], [0], [0], [1], [0, 0, 1, 1], [], []>} : vector<16x4xbf16>, vector<4x128xbf16>, vector<16x128xf32> -> vector<16x128xf32>
    %16 = vector.shape_cast %15 : vector<16x128xf32> to vector<1x16x128xf32>
    %c0_10 = arith.constant 0 : index
    %c0_11 = arith.constant 0 : index
    %17 = vector.load %arg5[%c0_10, %c0_11] : memref<1x128xf32, #tpu.memory_space<vmem>>, vector<1x128xf32>
    %18 = vector.shape_cast %17 : vector<1x128xf32> to vector<1x1x128xf32>
    %19 = vector.broadcast %18 : vector<1x1x128xf32> to vector<1x16x128xf32>
    %20 = arith.addf %16, %19 : vector<1x16x128xf32>
    %21 = vector.shape_cast %2 : vector<1x16x4xbf16> to vector<16x4xbf16>
    %c0_12 = arith.constant 0 : index
    %c0_13 = arith.constant 0 : index
    %22 = vector.load %arg4[%c0_12, %c0_13] : memref<4x128xbf16, #tpu.memory_space<vmem>>, vector<4x128xbf16>
    %cst_14 = arith.constant dense<0.000000e+00> : vector<16x128xf32>
    %23 = tpu.matmul %21, %22, %cst_14 {dimension_numbers = #tpu.dot_dimension_numbers<[1], [0], [0], [1], [0, 0, 1, 1], [], []>} : vector<16x4xbf16>, vector<4x128xbf16>, vector<16x128xf32> -> vector<16x128xf32>
    %24 = vector.shape_cast %23 : vector<16x128xf32> to vector<1x16x128xf32>
    %25 = arith.addf %20, %24 : vector<1x16x128xf32>
    %26 = arith.mulf %25, %25 : vector<1x16x128xf32>
    %cst_15 = arith.constant dense<0.000000e+00> : vector<1x16xf32>
    %27 = vector.multi_reduction <add>, %26, %cst_15 [2] : vector<1x16x128xf32> to vector<1x16xf32>
    %28 = vector.shape_cast %27 : vector<1x16xf32> to vector<1x16x1xf32>
    %cst_16 = arith.constant 1.000000e-24 : f32
    %29 = vector.broadcast %cst_16 : f32 to vector<1x16x1xf32>
    %30 = arith.maximumf %28, %29 : vector<1x16x1xf32>
    %31 = math.rsqrt %30 : vector<1x16x1xf32>
    %32 = vector.broadcast %31 : vector<1x16x1xf32> to vector<1x16x128xf32>
    %33 = arith.mulf %25, %32 : vector<1x16x128xf32>
    %c0_17 = arith.constant 0 : index
    %c0_18 = arith.constant 0 : index
    %34 = vector.load %arg6[%c0_17, %c0_18] : memref<1x128xf32, #tpu.memory_space<vmem>>, vector<1x128xf32>
    %35 = vector.shape_cast %34 : vector<1x128xf32> to vector<1x1x128xf32>
    %36 = vector.broadcast %35 : vector<1x1x128xf32> to vector<1x16x128xf32>
    %37 = arith.mulf %33, %36 : vector<1x16x128xf32>
    %c0_19 = arith.constant 0 : index
    %c0_20 = arith.constant 0 : index
    %38 = vector.load %arg7[%c0_19, %c0_20] : memref<1x128xf32, #tpu.memory_space<vmem>>, vector<1x128xf32>
    %39 = vector.shape_cast %38 : vector<1x128xf32> to vector<1x1x128xf32>
    %40 = vector.broadcast %39 : vector<1x1x128xf32> to vector<1x16x128xf32>
    %41 = arith.addf %37, %40 : vector<1x16x128xf32>
    %42 = arith.negf %41 : vector<1x16x128xf32>
    %43 = math.exp %42 : vector<1x16x128xf32>
    %cst_21 = arith.constant 1.000000e+00 : f32
    %44 = vector.broadcast %cst_21 : f32 to vector<1x16x128xf32>
    %45 = arith.addf %44, %43 : vector<1x16x128xf32>
    %46 = arith.divf %44, %45 : vector<1x16x128xf32>
    %47 = arith.truncf %46 : vector<1x16x128xf32> to vector<1x16x128xbf16>
    "tpu.trace_start"() <{level = 10 : i32, message = "bij,bjf->bif"}> : () -> ()
    %cst_22 = arith.constant dense<0.000000e+00> : vector<1x16x128xf32>
    %48 = tpu.matmul %0, %47, %cst_22 {dimension_numbers = #tpu.dot_dimension_numbers<[2], [1], [1], [2], [0, 0, 0, 1, 1, 2], [0], [0]>} : vector<1x16x16xbf16>, vector<1x16x128xbf16>, vector<1x16x128xf32> -> vector<1x16x128xf32>
    "tpu.trace_stop"() : () -> ()
    %49 = vector.broadcast %8 : vector<1x16x1xf32> to vector<1x16x128xf32>
    %50 = arith.mulf %48, %49 : vector<1x16x128xf32>
    %51 = vector.shape_cast %47 : vector<1x16x128xbf16> to vector<16x128xbf16>
    %c0_23 = arith.constant 0 : index
    %c0_24 = arith.constant 0 : index
    %52 = vector.load %arg12[%c0_23, %c0_24] : memref<128x256xbf16, #tpu.memory_space<vmem>>, vector<128x256xbf16>
    %cst_25 = arith.constant dense<0.000000e+00> : vector<16x256xf32>
    %53 = tpu.matmul %51, %52, %cst_25 {dimension_numbers = #tpu.dot_dimension_numbers<[1], [0], [0], [1], [0, 0, 1, 1], [], []>} : vector<16x128xbf16>, vector<128x256xbf16>, vector<16x256xf32> -> vector<16x256xf32>
    %54 = vector.shape_cast %53 : vector<16x256xf32> to vector<1x16x256xf32>
    %55 = arith.truncf %50 : vector<1x16x128xf32> to vector<1x16x128xbf16>
    %56 = vector.shape_cast %55 : vector<1x16x128xbf16> to vector<16x128xbf16>
    %c0_26 = arith.constant 0 : index
    %c0_27 = arith.constant 0 : index
    %57 = vector.load %arg8[%c0_26, %c0_27] : memref<128x128xbf16, #tpu.memory_space<vmem>>, vector<128x128xbf16>
    %cst_28 = arith.constant dense<0.000000e+00> : vector<16x128xf32>
    %58 = tpu.matmul %56, %57, %cst_28 {dimension_numbers = #tpu.dot_dimension_numbers<[1], [0], [0], [1], [0, 0, 1, 1], [], []>} : vector<16x128xbf16>, vector<128x128xbf16>, vector<16x128xf32> -> vector<16x128xf32>
    %59 = vector.shape_cast %58 : vector<16x128xf32> to vector<1x16x128xf32>
    %c0_29 = arith.constant 0 : index
    %c0_30 = arith.constant 0 : index
    %60 = vector.load %arg9[%c0_29, %c0_30] : memref<1x128xf32, #tpu.memory_space<vmem>>, vector<1x128xf32>
    %61 = vector.shape_cast %60 : vector<1x128xf32> to vector<1x1x128xf32>
    %62 = vector.broadcast %61 : vector<1x1x128xf32> to vector<1x16x128xf32>
    %63 = arith.addf %59, %62 : vector<1x16x128xf32>
    %64 = vector.extract_strided_slice %54 {offsets = [0, 0, 0], sizes = [1, 16, 128], strides = [1, 1, 1]} : vector<1x16x256xf32> to vector<1x16x128xf32>
    %65 = arith.addf %63, %64 : vector<1x16x128xf32>
    %66 = arith.mulf %65, %65 : vector<1x16x128xf32>
    %cst_31 = arith.constant dense<0.000000e+00> : vector<1x16xf32>
    %67 = vector.multi_reduction <add>, %66, %cst_31 [2] : vector<1x16x128xf32> to vector<1x16xf32>
    %68 = vector.shape_cast %67 : vector<1x16xf32> to vector<1x16x1xf32>
    %cst_32 = arith.constant 1.000000e-24 : f32
    %69 = vector.broadcast %cst_32 : f32 to vector<1x16x1xf32>
    %70 = arith.maximumf %68, %69 : vector<1x16x1xf32>
    %71 = math.rsqrt %70 : vector<1x16x1xf32>
    %72 = vector.broadcast %71 : vector<1x16x1xf32> to vector<1x16x128xf32>
    %73 = arith.mulf %65, %72 : vector<1x16x128xf32>
    %c0_33 = arith.constant 0 : index
    %c0_34 = arith.constant 0 : index
    %74 = vector.load %arg10[%c0_33, %c0_34] : memref<1x128xf32, #tpu.memory_space<vmem>>, vector<1x128xf32>
    %75 = vector.shape_cast %74 : vector<1x128xf32> to vector<1x1x128xf32>
    %76 = vector.broadcast %75 : vector<1x1x128xf32> to vector<1x16x128xf32>
    %77 = arith.mulf %73, %76 : vector<1x16x128xf32>
    %c0_35 = arith.constant 0 : index
    %c0_36 = arith.constant 0 : index
    %78 = vector.load %arg11[%c0_35, %c0_36] : memref<1x128xf32, #tpu.memory_space<vmem>>, vector<1x128xf32>
    %79 = vector.shape_cast %78 : vector<1x128xf32> to vector<1x1x128xf32>
    %80 = vector.broadcast %79 : vector<1x1x128xf32> to vector<1x16x128xf32>
    %81 = arith.addf %77, %80 : vector<1x16x128xf32>
    %cst_37 = arith.constant 0.000000e+00 : f32
    %82 = vector.broadcast %cst_37 : f32 to vector<1x16x128xf32>
    %83 = arith.maximumf %81, %82 : vector<1x16x128xf32>
    %84 = vector.extract_strided_slice %54 {offsets = [0, 0, 128], sizes = [1, 16, 128], strides = [1, 1, 1]} : vector<1x16x256xf32> to vector<1x16x128xf32>
    %85 = arith.truncf %83 : vector<1x16x128xf32> to vector<1x16x128xbf16>
    %86 = vector.shape_cast %85 : vector<1x16x128xbf16> to vector<16x128xbf16>
    %c0_38 = arith.constant 0 : index
    %c0_39 = arith.constant 0 : index
    %87 = vector.load %arg13[%c0_38, %c0_39] : memref<128x128xbf16, #tpu.memory_space<vmem>>, vector<128x128xbf16>
    %cst_40 = arith.constant dense<0.000000e+00> : vector<16x128xf32>
    %88 = tpu.matmul %86, %87, %cst_40 {dimension_numbers = #tpu.dot_dimension_numbers<[1], [0], [0], [1], [0, 0, 1, 1], [], []>} : vector<16x128xbf16>, vector<128x128xbf16>, vector<16x128xf32> -> vector<16x128xf32>
    %89 = vector.shape_cast %88 : vector<16x128xf32> to vector<1x16x128xf32>
    %90 = arith.addf %84, %89 : vector<1x16x128xf32>
    %c0_41 = arith.constant 0 : index
    %c0_42 = arith.constant 0 : index
    %91 = vector.load %arg14[%c0_41, %c0_42] : memref<1x128xf32, #tpu.memory_space<vmem>>, vector<1x128xf32>
    %92 = vector.shape_cast %91 : vector<1x128xf32> to vector<1x1x128xf32>
    %93 = vector.broadcast %92 : vector<1x1x128xf32> to vector<1x16x128xf32>
    %94 = arith.addf %90, %93 : vector<1x16x128xf32>
    %cst_43 = arith.constant 0.000000e+00 : f32
    %95 = vector.broadcast %cst_43 : f32 to vector<1x16x128xf32>
    %96 = arith.maximumf %94, %95 : vector<1x16x128xf32>
    %97 = arith.truncf %96 : vector<1x16x128xf32> to vector<1x16x128xbf16>
    %c0_44 = arith.constant 0 : index
    %c0_45 = arith.constant 0 : index
    %c0_46 = arith.constant 0 : index
    %98 = vector.load %arg15[%c0_44, %c0_45, %c0_46] : memref<1x16x128xbf16, #tpu.memory_space<vmem>>, vector<1x16x128xbf16>
    tpu.vector_store %arg15[%c0_44, %c0_45, %c0_46], %97 {strides = array<i32>} : memref<1x16x128xbf16, #tpu.memory_space<vmem>>, vector<1x16x128xbf16>,
    return
  }
  func.func @transform_0(%arg0: i32) -> (i32, i32, i32) {
    %c0_i32 = arith.constant 0 : i32
    %c0_i32_0 = arith.constant 0 : i32
    %c0_i32_1 = arith.constant 0 : i32
    return %arg0, %c0_i32, %c0_i32_0 : i32, i32, i32
  }
  func.func @transform_1(%arg0: i32) -> (i32, i32, i32) {
    %c0_i32 = arith.constant 0 : i32
    %c0_i32_0 = arith.constant 0 : i32
    %c0_i32_1 = arith.constant 0 : i32
    return %arg0, %c0_i32, %c0_i32_0 : i32, i32, i32
  }
  func.func @transform_2(%arg0: i32) -> (i32, i32) {
    %c0_i32 = arith.constant 0 : i32
    %c0_i32_0 = arith.constant 0 : i32
    %c0_i32_1 = arith.constant 0 : i32
    return %c0_i32, %c0_i32_0 : i32, i32
  }
  func.func @transform_3(%arg0: i32) -> (i32, i32) {
    %c0_i32 = arith.constant 0 : i32
    %c0_i32_0 = arith.constant 0 : i32
    %c0_i32_1 = arith.constant 0 : i32
    return %c0_i32, %c0_i32_0 : i32, i32
  }
  func.func @transform_4(%arg0: i32) -> (i32, i32) {
    %c0_i32 = arith.constant 0 : i32
    %c0_i32_0 = arith.constant 0 : i32
    %c0_i32_1 = arith.constant 0 : i32
    return %c0_i32, %c0_i32_0 : i32, i32
  }
  func.func @transform_5(%arg0: i32) -> (i32, i32) {
    %c0_i32 = arith.constant 0 : i32
    %c0_i32_0 = arith.constant 0 : i32
    %c0_i32_1 = arith.constant 0 : i32
    return %c0_i32, %c0_i32_0 : i32, i32
  }
  func.func @transform_6(%arg0: i32) -> (i32, i32) {
    %c0_i32 = arith.constant 0 : i32
    %c0_i32_0 = arith.constant 0 : i32
    %c0_i32_1 = arith.constant 0 : i32
    return %c0_i32, %c0_i32_0 : i32, i32
  }
  func.func @transform_7(%arg0: i32) -> (i32, i32) {
    %c0_i32 = arith.constant 0 : i32
    %c0_i32_0 = arith.constant 0 : i32
    %c0_i32_1 = arith.constant 0 : i32
    return %c0_i32, %c0_i32_0 : i32, i32
  }
  func.func @transform_8(%arg0: i32) -> (i32, i32) {
    %c0_i32 = arith.constant 0 : i32
    %c0_i32_0 = arith.constant 0 : i32
    %c0_i32_1 = arith.constant 0 : i32
    return %c0_i32, %c0_i32_0 : i32, i32
  }
  func.func @transform_9(%arg0: i32) -> (i32, i32) {
    %c0_i32 = arith.constant 0 : i32
    %c0_i32_0 = arith.constant 0 : i32
    %c0_i32_1 = arith.constant 0 : i32
    return %c0_i32, %c0_i32_0 : i32, i32
  }
  func.func @transform_10(%arg0: i32) -> (i32, i32) {
    %c0_i32 = arith.constant 0 : i32
    %c0_i32_0 = arith.constant 0 : i32
    %c0_i32_1 = arith.constant 0 : i32
    return %c0_i32, %c0_i32_0 : i32, i32
  }
  func.func @transform_11(%arg0: i32) -> (i32, i32) {
    %c0_i32 = arith.constant 0 : i32
    %c0_i32_0 = arith.constant 0 : i32
    %c0_i32_1 = arith.constant 0 : i32
    return %c0_i32, %c0_i32_0 : i32, i32
  }
  func.func @transform_12(%arg0: i32) -> (i32, i32) {
    %c0_i32 = arith.constant 0 : i32
    %c0_i32_0 = arith.constant 0 : i32
    %c0_i32_1 = arith.constant 0 : i32
    return %c0_i32, %c0_i32_0 : i32, i32
  }
  func.func @transform_13(%arg0: i32) -> (i32, i32) {
    %c0_i32 = arith.constant 0 : i32
    %c0_i32_0 = arith.constant 0 : i32
    %c0_i32_1 = arith.constant 0 : i32
    return %c0_i32, %c0_i32_0 : i32, i32
  }
  func.func @transform_14(%arg0: i32) -> (i32, i32, i32) {
    %c0_i32 = arith.constant 0 : i32
    %c0_i32_0 = arith.constant 0 : i32
    %c0_i32_1 = arith.constant 0 : i32
    return %arg0, %c0_i32, %c0_i32_0 : i32, i32, i32
  }
}

module attributes {stable_mosaic.version = 11 : i64} {
  func.func @gnn_emb_kernel(%arg0: i32, %arg1: memref<1x16x4xf32, #tpu.memory_space<vmem>>, %arg2: memref<1x16x16xbf16, #tpu.memory_space<vmem>>, %arg3: memref<4x128xbf16, #tpu.memory_space<vmem>>, %arg4: memref<4x128xbf16, #tpu.memory_space<vmem>>, %arg5: memref<1x128xf32, #tpu.memory_space<vmem>>, %arg6: memref<1x128xf32, #tpu.memory_space<vmem>>, %arg7: memref<1x128xf32, #tpu.memory_space<vmem>>, %arg8: memref<128x128xbf16, #tpu.memory_space<vmem>>, %arg9: memref<1x128xf32, #tpu.memory_space<vmem>>, %arg10: memref<1x128xf32, #tpu.memory_space<vmem>>, %arg11: memref<1x128xf32, #tpu.memory_space<vmem>>, %arg12: memref<128x256xbf16, #tpu.memory_space<vmem>>, %arg13: memref<128x128xbf16, #tpu.memory_space<vmem>>, %arg14: memref<1x128xf32, #tpu.memory_space<vmem>>, %arg15: memref<1x16x128xbf16, #tpu.memory_space<vmem>>) attributes {dimension_semantics = [#tpu.dimension_semantics<parallel>], iteration_bounds = array<i64: 2>, scalar_prefetch = 0 : i64, scratch_operands = 0 : i64, tpu.core_type = #tpu.core_type<tc>, window_params = [{transform_indices = @transform_0, window_bounds = array<i64: 1, 16, 4>}, {transform_indices = @transform_1, window_bounds = array<i64: 1, 16, 16>}, {pipeline_mode = #tpu.pipeline_mode<synchronous>, transform_indices = @transform_2, window_bounds = array<i64: 4, 128>}, {pipeline_mode = #tpu.pipeline_mode<synchronous>, transform_indices = @transform_3, window_bounds = array<i64: 4, 128>}, {pipeline_mode = #tpu.pipeline_mode<synchronous>, transform_indices = @transform_4, window_bounds = array<i64: 1, 128>}, {pipeline_mode = #tpu.pipeline_mode<synchronous>, transform_indices = @transform_5, window_bounds = array<i64: 1, 128>}, {pipeline_mode = #tpu.pipeline_mode<synchronous>, transform_indices = @transform_6, window_bounds = array<i64: 1, 128>}, {pipeline_mode = #tpu.pipeline_mode<synchronous>, transform_indices = @transform_7, window_bounds = array<i64: 128, 128>}, {pipeline_mode = #tpu.pipeline_mode<synchronous>, transform_indices = @transform_8, window_bounds = array<i64: 1, 128>}, {pipeline_mode = #tpu.pipeline_mode<synchronous>, transform_indices = @transform_9, window_bounds = array<i64: 1, 128>}, {pipeline_mode = #tpu.pipeline_mode<synchronous>, transform_indices = @transform_10, window_bounds = array<i64: 1, 128>}, {pipeline_mode = #tpu.pipeline_mode<synchronous>, transform_indices = @transform_11, window_bounds = array<i64: 128, 256>}, {pipeline_mode = #tpu.pipeline_mode<synchronous>, transform_indices = @transform_12, window_bounds = array<i64: 128, 128>}, {pipeline_mode = #tpu.pipeline_mode<synchronous>, transform_indices = @transform_13, window_bounds = array<i64: 1, 128>}, {transform_indices = @transform_14, window_bounds = array<i64: 1, 16, 128>}]} {
    %c0 = arith.constant 0 : index
    %c0_0 = arith.constant 0 : index
    %c0_1 = arith.constant 0 : index
    %0 = vector.load %arg2[%c0, %c0_0, %c0_1] : memref<1x16x16xbf16, #tpu.memory_space<vmem>>, vector<1x16x16xbf16>
    %c0_2 = arith.constant 0 : index
    %c0_3 = arith.constant 0 : index
    %c0_4 = arith.constant 0 : index
    %1 = vector.load %arg1[%c0_2, %c0_3, %c0_4] : memref<1x16x4xf32, #tpu.memory_space<vmem>>, vector<1x16x4xf32>
    %2 = arith.truncf %1 : vector<1x16x4xf32> to vector<1x16x4xbf16>
    %3 = arith.extf %0 : vector<1x16x16xbf16> to vector<1x16x16xf32>
    %cst = arith.constant dense<0.000000e+00> : vector<1x16xf32>
    %4 = vector.multi_reduction <add>, %3, %cst [2] : vector<1x16x16xf32> to vector<1x16xf32>
    %5 = vector.shape_cast %4 : vector<1x16xf32> to vector<1x16x1xf32>
    %cst_5 = arith.constant 1.000000e+00 : f32
    %6 = vector.broadcast %cst_5 : f32 to vector<1x16x1xf32>
    %7 = arith.maximumf %5, %6 : vector<1x16x1xf32>
    %8 = tpu.reciprocal %7 {approx = true} : vector<1x16x1xf32> -> vector<1x16x1xf32>
    "tpu.trace_start"() <{level = 10 : i32, message = "bij,bjf->bif"}> : () -> ()
    %cst_6 = arith.constant dense<0.000000e+00> : vector<1x16x4xf32>
    %9 = tpu.matmul %0, %2, %cst_6 {dimension_numbers = #tpu.dot_dimension_numbers<[2], [1], [1], [2], [0, 0, 0, 1, 1, 2], [0], [0]>} : vector<1x16x16xbf16>, vector<1x16x4xbf16>, vector<1x16x4xf32> -> vector<1x16x4xf32>
    "tpu.trace_stop"() : () -> ()
    %10 = vector.broadcast %8 : vector<1x16x1xf32> to vector<1x16x4xf32>
    %11 = arith.mulf %9, %10 : vector<1x16x4xf32>
    %12 = arith.truncf %11 : vector<1x16x4xf32> to vector<1x16x4xbf16>
    %13 = vector.shape_cast %12 : vector<1x16x4xbf16> to vector<16x4xbf16>
    %c0_7 = arith.constant 0 : index
    %c0_8 = arith.constant 0 : index
    %14 = vector.load %arg3[%c0_7, %c0_8] : memref<4x128xbf16, #tpu.memory_space<vmem>>, vector<4x128xbf16>
    %cst_9 = arith.constant dense<0.000000e+00> : vector<16x128xf32>
    %15 = tpu.matmul %13, %14, %cst_9 {dimension_numbers = #tpu.dot_dimension_numbers<[1], [0], [0], [1], [0, 0, 1, 1], [], []>} : vector<16x4xbf16>, vector<4x128xbf16>, vector<16x128xf32> -> vector<16x128xf32>
    %16 = vector.shape_cast %15 : vector<16x128xf32> to vector<1x16x128xf32>
    %c0_10 = arith.constant 0 : index
    %c0_11 = arith.constant 0 : index
    %17 = vector.load %arg5[%c0_10, %c0_11] : memref<1x128xf32, #tpu.memory_space<vmem>>, vector<1x128xf32>
    %18 = vector.shape_cast %17 : vector<1x128xf32> to vector<1x1x128xf32>
    %19 = vector.broadcast %18 : vector<1x1x128xf32> to vector<1x16x128xf32>
    %20 = arith.addf %16, %19 : vector<1x16x128xf32>
    %21 = vector.shape_cast %2 : vector<1x16x4xbf16> to vector<16x4xbf16>
    %c0_12 = arith.constant 0 : index
    %c0_13 = arith.constant 0 : index
    %22 = vector.load %arg4[%c0_12, %c0_13] : memref<4x128xbf16, #tpu.memory_space<vmem>>, vector<4x128xbf16>
    %cst_14 = arith.constant dense<0.000000e+00> : vector<16x128xf32>
    %23 = tpu.matmul %21, %22, %cst_14 {dimension_numbers = #tpu.dot_dimension_numbers<[1], [0], [0], [1], [0, 0, 1, 1], [], []>} : vector<16x4xbf16>, vector<4x128xbf16>, vector<16x128xf32> -> vector<16x128xf32>
    %24 = vector.shape_cast %23 : vector<16x128xf32> to vector<1x16x128xf32>
    %25 = arith.addf %20, %24 : vector<1x16x128xf32>
    %26 = arith.mulf %25, %25 : vector<1x16x128xf32>
    %cst_15 = arith.constant dense<0.000000e+00> : vector<1x16xf32>
    %27 = vector.multi_reduction <add>, %26, %cst_15 [2] : vector<1x16x128xf32> to vector<1x16xf32>
    %28 = vector.shape_cast %27 : vector<1x16xf32> to vector<1x16x1xf32>
    %cst_16 = arith.constant 1.000000e-24 : f32
    %29 = vector.broadcast %cst_16 : f32 to vector<1x16x1xf32>
    %30 = arith.maximumf %28, %29 : vector<1x16x1xf32>
    %31 = math.rsqrt %30 : vector<1x16x1xf32>
    %32 = vector.broadcast %31 : vector<1x16x1xf32> to vector<1x16x128xf32>
    %33 = arith.mulf %25, %32 : vector<1x16x128xf32>
    %c0_17 = arith.constant 0 : index
    %c0_18 = arith.constant 0 : index
    %34 = vector.load %arg6[%c0_17, %c0_18] : memref<1x128xf32, #tpu.memory_space<vmem>>, vector<1x128xf32>
    %35 = vector.shape_cast %34 : vector<1x128xf32> to vector<1x1x128xf32>
    %36 = vector.broadcast %35 : vector<1x1x128xf32> to vector<1x16x128xf32>
    %37 = arith.mulf %33, %36 : vector<1x16x128xf32>
    %c0_19 = arith.constant 0 : index
    %c0_20 = arith.constant 0 : index
    %38 = vector.load %arg7[%c0_19, %c0_20] : memref<1x128xf32, #tpu.memory_space<vmem>>, vector<1x128xf32>
    %39 = vector.shape_cast %38 : vector<1x128xf32> to vector<1x1x128xf32>
    %40 = vector.broadcast %39 : vector<1x1x128xf32> to vector<1x16x128xf32>
    %41 = arith.addf %37, %40 : vector<1x16x128xf32>
    %42 = arith.negf %41 : vector<1x16x128xf32>
    %43 = math.exp %42 : vector<1x16x128xf32>
    %cst_21 = arith.constant 1.000000e+00 : f32
    %44 = vector.broadcast %cst_21 : f32 to vector<1x16x128xf32>
    %45 = arith.addf %44, %43 : vector<1x16x128xf32>
    %46 = arith.divf %44, %45 : vector<1x16x128xf32>
    %47 = arith.truncf %46 : vector<1x16x128xf32> to vector<1x16x128xbf16>
    "tpu.trace_start"() <{level = 10 : i32, message = "bij,bjf->bif"}> : () -> ()
    %cst_22 = arith.constant dense<0.000000e+00> : vector<1x16x128xf32>
    %48 = tpu.matmul %0, %47, %cst_22 {dimension_numbers = #tpu.dot_dimension_numbers<[2], [1], [1], [2], [0, 0, 0, 1, 1, 2], [0], [0]>} : vector<1x16x16xbf16>, vector<1x16x128xbf16>, vector<1x16x128xf32> -> vector<1x16x128xf32>
    "tpu.trace_stop"() : () -> ()
    %49 = vector.broadcast %8 : vector<1x16x1xf32> to vector<1x16x128xf32>
    %50 = arith.mulf %48, %49 : vector<1x16x128xf32>
    %51 = vector.shape_cast %47 : vector<1x16x128xbf16> to vector<16x128xbf16>
    %c0_23 = arith.constant 0 : index
    %c0_24 = arith.constant 0 : index
    %52 = vector.load %arg12[%c0_23, %c0_24] : memref<128x256xbf16, #tpu.memory_space<vmem>>, vector<128x256xbf16>
    %cst_25 = arith.constant dense<0.000000e+00> : vector<16x256xf32>
    %53 = tpu.matmul %51, %52, %cst_25 {dimension_numbers = #tpu.dot_dimension_numbers<[1], [0], [0], [1], [0, 0, 1, 1], [], []>} : vector<16x128xbf16>, vector<128x256xbf16>, vector<16x256xf32> -> vector<16x256xf32>
    %54 = vector.shape_cast %53 : vector<16x256xf32> to vector<1x16x256xf32>
    %55 = arith.truncf %50 : vector<1x16x128xf32> to vector<1x16x128xbf16>
    %56 = vector.shape_cast %55 : vector<1x16x128xbf16> to vector<16x128xbf16>
    %c0_26 = arith.constant 0 : index
    %c0_27 = arith.constant 0 : index
    %57 = vector.load %arg8[%c0_26, %c0_27] : memref<128x128xbf16, #tpu.memory_space<vmem>>, vector<128x128xbf16>
    %cst_28 = arith.constant dense<0.000000e+00> : vector<16x128xf32>
    %58 = tpu.matmul %56, %57, %cst_28 {dimension_numbers = #tpu.dot_dimension_numbers<[1], [0], [0], [1], [0, 0, 1, 1], [], []>} : vector<16x128xbf16>, vector<128x128xbf16>, vector<16x128xf32> -> vector<16x128xf32>
    %59 = vector.shape_cast %58 : vector<16x128xf32> to vector<1x16x128xf32>
    %c0_29 = arith.constant 0 : index
    %c0_30 = arith.constant 0 : index
    %60 = vector.load %arg9[%c0_29, %c0_30] : memref<1x128xf32, #tpu.memory_space<vmem>>, vector<1x128xf32>
    %61 = vector.shape_cast %60 : vector<1x128xf32> to vector<1x1x128xf32>
    %62 = vector.broadcast %61 : vector<1x1x128xf32> to vector<1x16x128xf32>
    %63 = arith.addf %59, %62 : vector<1x16x128xf32>
    %64 = vector.extract_strided_slice %54 {offsets = [0, 0, 0], sizes = [1, 16, 128], strides = [1, 1, 1]} : vector<1x16x256xf32> to vector<1x16x128xf32>
    %65 = arith.addf %63, %64 : vector<1x16x128xf32>
    %66 = arith.mulf %65, %65 : vector<1x16x128xf32>
    %cst_31 = arith.constant dense<0.000000e+00> : vector<1x16xf32>
    %67 = vector.multi_reduction <add>, %66, %cst_31 [2] : vector<1x16x128xf32> to vector<1x16xf32>
    %68 = vector.shape_cast %67 : vector<1x16xf32> to vector<1x16x1xf32>
    %cst_32 = arith.constant 1.000000e-24 : f32
    %69 = vector.broadcast %cst_32 : f32 to vector<1x16x1xf32>
    %70 = arith.maximumf %68, %69 : vector<1x16x1xf32>
    %71 = math.rsqrt %70 : vector<1x16x1xf32>
    %72 = vector.broadcast %71 : vector<1x16x1xf32> to vector<1x16x128xf32>
    %73 = arith.mulf %65, %72 : vector<1x16x128xf32>
    %c0_33 = arith.constant 0 : index
    %c0_34 = arith.constant 0 : index
    %74 = vector.load %arg10[%c0_33, %c0_34] : memref<1x128xf32, #tpu.memory_space<vmem>>, vector<1x128xf32>
    %75 = vector.shape_cast %74 : vector<1x128xf32> to vector<1x1x128xf32>
    %76 = vector.broadcast %75 : vector<1x1x128xf32> to vector<1x16x128xf32>
    %77 = arith.mulf %73, %76 : vector<1x16x128xf32>
    %c0_35 = arith.constant 0 : index
    %c0_36 = arith.constant 0 : index
    %78 = vector.load %arg11[%c0_35, %c0_36] : memref<1x128xf32, #tpu.memory_space<vmem>>, vector<1x128xf32>
    %79 = vector.shape_cast %78 : vector<1x128xf32> to vector<1x1x128xf32>
    %80 = vector.broadcast %79 : vector<1x1x128xf32> to vector<1x16x128xf32>
    %81 = arith.addf %77, %80 : vector<1x16x128xf32>
    %cst_37 = arith.constant 0.000000e+00 : f32
    %82 = vector.broadcast %cst_37 : f32 to vector<1x16x128xf32>
    %83 = arith.maximumf %81, %82 : vector<1x16x128xf32>
    %84 = vector.extract_strided_slice %54 {offsets = [0, 0, 128], sizes = [1, 16, 128], strides = [1, 1, 1]} : vector<1x16x256xf32> to vector<1x16x128xf32>
    %85 = arith.truncf %83 : vector<1x16x128xf32> to vector<1x16x128xbf16>
    %86 = vector.shape_cast %85 : vector<1x16x128xbf16> to vector<16x128xbf16>
    %c0_38 = arith.constant 0 : index
    %c0_39 = arith.constant 0 : index
    %87 = vector.load %arg13[%c0_38, %c0_39] : memref<128x128xbf16, #tpu.memory_space<vmem>>, vector<128x128xbf16>
    %cst_40 = arith.constant dense<0.000000e+00> : vector<16x128xf32>
    %88 = tpu.matmul %86, %87, %cst_40 {dimension_numbers = #tpu.dot_dimension_numbers<[1], [0], [0], [1], [0, 0, 1, 1], [], []>} : vector<16x128xbf16>, vector<128x128xbf16>, vector<16x128xf32> -> vector<16x128xf32>
    %89 = vector.shape_cast %88 : vector<16x128xf32> to vector<1x16x128xf32>
    %90 = arith.addf %84, %89 : vector<1x16x128xf32>
    %c0_41 = arith.constant 0 : index
    %c0_42 = arith.constant 0 : index
    %91 = vector.load %arg14[%c0_41, %c0_42] : memref<1x128xf32, #tpu.memory_space<vmem>>, vector<1x128xf32>
    %92 = vector.shape_cast %91 : vector<1x128xf32> to vector<1x1x128xf32>
    %93 = vector.broadcast %92 : vector<1x1x128xf32> to vector<1x16x128xf32>
    %94 = arith.addf %90, %93 : vector<1x16x128xf32>
    %cst_43 = arith.constant 0.000000e+00 : f32
    %95 = vector.broadcast %cst_43 : f32 to vector<1x16x128xf32>
    %96 = arith.maximumf %94, %95 : vector<1x16x128xf32>
    %97 = arith.truncf %96 : vector<1x16x128xf32> to vector<1x16x128xbf16>
    %c0_44 = arith.constant 0 : index
    %c0_45 = arith.constant 0 : index
    %c0_46 = arith.constant 0 : index
    %98 = vector.load %arg15[%c0_44, %c0_45, %c0_46] : memref<1x16x128xbf16, #tpu.memory_space<vmem>>, vector<1x16x128xbf16>
    tpu.vector_store %arg15[%c0_44, %c0_45, %c0_46], %97 {strides = array<i32>} : memref<1x16x128xbf16, #tpu.memory_space<vmem>>, vector<1x16x128xbf16>,
    return
  }
  func.func @transform_0(%arg0: i32) -> (i32, i32, i32) {
    %c0_i32 = arith.constant 0 : i32
    %c0_i32_0 = arith.constant 0 : i32
    %c0_i32_1 = arith.constant 0 : i32
    return %arg0, %c0_i32, %c0_i32_0 : i32, i32, i32
  }
  func.func @transform_1(%arg0: i32) -> (i32, i32, i32) {
    %c0_i32 = arith.constant 0 : i32
    %c0_i32_0 = arith.constant 0 : i32
    %c0_i32_1 = arith.constant 0 : i32
    return %arg0, %c0_i32, %c0_i32_0 : i32, i32, i32
  }
  func.func @transform_2(%arg0: i32) -> (i32, i32) {
    %c0_i32 = arith.constant 0 : i32
    %c0_i32_0 = arith.constant 0 : i32
    %c0_i32_1 = arith.constant 0 : i32
    return %c0_i32, %c0_i32_0 : i32, i32
  }
  func.func @transform_3(%arg0: i32) -> (i32, i32) {
    %c0_i32 = arith.constant 0 : i32
    %c0_i32_0 = arith.constant 0 : i32
    %c0_i32_1 = arith.constant 0 : i32
    return %c0_i32, %c0_i32_0 : i32, i32
  }
  func.func @transform_4(%arg0: i32) -> (i32, i32) {
    %c0_i32 = arith.constant 0 : i32
    %c0_i32_0 = arith.constant 0 : i32
    %c0_i32_1 = arith.constant 0 : i32
    return %c0_i32, %c0_i32_0 : i32, i32
  }
  func.func @transform_5(%arg0: i32) -> (i32, i32) {
    %c0_i32 = arith.constant 0 : i32
    %c0_i32_0 = arith.constant 0 : i32
    %c0_i32_1 = arith.constant 0 : i32
    return %c0_i32, %c0_i32_0 : i32, i32
  }
  func.func @transform_6(%arg0: i32) -> (i32, i32) {
    %c0_i32 = arith.constant 0 : i32
    %c0_i32_0 = arith.constant 0 : i32
    %c0_i32_1 = arith.constant 0 : i32
    return %c0_i32, %c0_i32_0 : i32, i32
  }
  func.func @transform_7(%arg0: i32) -> (i32, i32) {
    %c0_i32 = arith.constant 0 : i32
    %c0_i32_0 = arith.constant 0 : i32
    %c0_i32_1 = arith.constant 0 : i32
    return %c0_i32, %c0_i32_0 : i32, i32
  }
  func.func @transform_8(%arg0: i32) -> (i32, i32) {
    %c0_i32 = arith.constant 0 : i32
    %c0_i32_0 = arith.constant 0 : i32
    %c0_i32_1 = arith.constant 0 : i32
    return %c0_i32, %c0_i32_0 : i32, i32
  }
  func.func @transform_9(%arg0: i32) -> (i32, i32) {
    %c0_i32 = arith.constant 0 : i32
    %c0_i32_0 = arith.constant 0 : i32
    %c0_i32_1 = arith.constant 0 : i32
    return %c0_i32, %c0_i32_0 : i32, i32
  }
  func.func @transform_10(%arg0: i32) -> (i32, i32) {
    %c0_i32 = arith.constant 0 : i32
    %c0_i32_0 = arith.constant 0 : i32
    %c0_i32_1 = arith.constant 0 : i32
    return %c0_i32, %c0_i32_0 : i32, i32
  }
  func.func @transform_11(%arg0: i32) -> (i32, i32) {
    %c0_i32 = arith.constant 0 : i32
    %c0_i32_0 = arith.constant 0 : i32
    %c0_i32_1 = arith.constant 0 : i32
    return %c0_i32, %c0_i32_0 : i32, i32
  }
  func.func @transform_12(%arg0: i32) -> (i32, i32) {
    %c0_i32 = arith.constant 0 : i32
    %c0_i32_0 = arith.constant 0 : i32
    %c0_i32_1 = arith.constant 0 : i32
    return %c0_i32, %c0_i32_0 : i32, i32
  }
  func.func @transform_13(%arg0: i32) -> (i32, i32) {
    %c0_i32 = arith.constant 0 : i32
    %c0_i32_0 = arith.constant 0 : i32
    %c0_i32_1 = arith.constant 0 : i32
    return %c0_i32, %c0_i32_0 : i32, i32
  }
  func.func @transform_14(%arg0: i32) -> (i32, i32, i32) {
    %c0_i32 = arith.constant 0 : i32
    %c0_i32_0 = arith.constant 0 : i32
    %c0_i32_1 = arith.constant 0 : i32
    return %arg0, %c0_i32, %c0_i32_0 : i32, i32, i32
  }
}

</mosaic_0001>

<bundles_post_ra>
// kernel: tpu_custom_call.1
= control target key start
LH: loop header
LB: loop body
LE: loop exit
PB: predicated region body
PF: predicated region fallthrough
CT: control target
= control target key end

     0   :  { %19 = vsyncpa [#allocation3], 0  ;;  %s2110_s0 = inlined_call_operand.vmem [shape: f32[2,16,4], index: 0, kind: input, shape index: {}]   ;;  %s2111_s1 = inlined_call_operand.vmem [shape: bf16[2,16,16], index: 1, kind: input, shape index: {}]   ;;  %s2112_s2 = inlined_call_operand.vmem [shape: bf16[4,128], index: 2, kind: input, shape index: {}]   ;;  %s2113_s3 = inlined_call_operand.vmem [shape: bf16[4,128], index: 3, kind: input, shape index: {}]   ;;  %s2114_s4 = inlined_call_operand.vmem [shape: f32[1,128], index: 4, kind: input, shape index: {}]   ;;  %s2115_s5 = inlined_call_operand.vmem [shape: f32[1,128], index: 5, kind: input, shape index: {}]   ;;  %s2116_s6 = inlined_call_operand.vmem [shape: f32[1,128], index: 6, kind: input, shape index: {}]   ;;  %s2117_s7 = inlined_call_operand.hbm [shape: bf16[128,128], index: 7, kind: input, shape index: {}]   ;;  %s2118_s8 = inlined_call_operand.vmem [shape: f32[1,128], index: 8, kind: input, shape index: {}]   ;;  %s2119_s9 = inlined_call_operand.vmem [shape: f32[1,128], index: 9, kind: input, shape index: {}]   ;;  %s2120_s10 = inlined_call_operand.vmem [shape: f32[1,128], index: 10, kind: input, shape index: {}]   ;;  %s2121_s11 = inlined_call_operand.hbm [shape: bf16[128,256], index: 11, kind: input, shape index: {}]   ;;  %s2122_s12 = inlined_call_operand.hbm [shape: bf16[128,128], index: 12, kind: input, shape index: {}]   ;;  %s2123_s13 = inlined_call_operand.vmem [shape: f32[1,128], index: 13, kind: input, shape index: {}]   ;;  %s2124_s14 = inlined_call_operand.hbm [shape: bf16[2,16,128], index: 14, kind: output, shape index: {}]  }
   0x1   :  { %20 = vsyncpa [#allocation6], 0 }
   0x2   :  { %21 = vsyncpa [#allocation4], 0 }
   0x3   :  { %23 = vsyncpa [#allocation4 + $0x1], 0  ;;  %s1877_s29 = smov 0   ;;  %s1879_s30 = smov 0  }
   0x4   :  { %s1881_s15 = smov 0   ;;  %s1883_s16 = smov 0  }
   0x5 LB: > { %2132 = sst [smem:[#allocation12_spill]] %s1775_s29  ;;  %s1898_s17 = sadd.s32 4294967295, %s1787_s16   ;;  %s1787_s16 = sphi %s1883_s16, %s2150_s16   ;;  %s1783_s15 = sphi %s1881_s15, %s2152_s15   ;;  %s1779_s30 = sphi %s1879_s30, %s2154_s30   ;;  %s1775_s29 = sphi %s1877_s29, %s2153_s29  }
   0x6   : > { %2133 = sst [smem:[#allocation13_spill]] %s1783_s15  ;;  %s1332_s18 = sadd.s32 4294967294, %s1787_s16  }
   0x7   : > { %2134 = sst [smem:[#allocation14_spill]] %s1787_s16  ;;  %s1902_s19 = sadd.s32 1, %s1787_s16  }
   0x8   : > { %2135 = sst [smem:[#allocation15_spill]] %s1902_s19  ;;  %s340_s20 = sadd.s32 1, %s1783_s15 }
   0x9   : > { %s337_s21 = ssub.s32 %s1787_s16, %s1902_s19  ;;  %p350_p0 = scmp.ne.s32.totalorder %s1783_s15, %s1779_s30 }
   0xa   : > { %p338_p1 = scmp.eq.s32.totalorder %s337_s21, 0  ;;  %p351_p2 = scmp.eq.s32.totalorder %s1898_s17, 1 }
   0xb   : > { %p356_p3 = scmp.ne.s32.totalorder %s1779_s30, %s1775_s29  ;;  %p357_p4 = scmp.eq.s32.totalorder %s1332_s18, 1 }
   0xc   : > { %s1913_s22 = scalar_select %p338_p1, %s1783_s15, %s340_s20  }
   0xd   : > { %p1915_p5 = por %p351_p2, %p350_p0  ;;  %p1919_p6 = por %p357_p4, %p356_p3 }
   0xe   : > { %2136 = sst [smem:[#allocation16_spill]] %s1913_s22  ;;  %p1333_p7 = scmp.ge.s32.totalorder %s1787_s16, 1 }
   0xf   : > { %s2138_s24 = scalar_select %p1919_p6, 1, 0 }
  0x10   : > { %p364_p8 = scmp.lt.s32.totalorder %s1787_s16, 3  ;;  %p2128_p9 = scmp.eq.s32.totalorder %s1898_s17, 0 }
  0x11   : > { %2139 = sst [smem:[#allocation17_spill]] %s2138_s24  ;;  %s1789_s26 = smov [#allocation5]  }
  0x12   : > { %p1926_p10 = pnand %p1333_p7, %p364_p8  ;;  %s413_s27 = sshll.u32 %s1789_s26, 4  ;;  %s414_s27 = int_to_ptr.vmem [resolvable:$true] %s413_s27 }
  0x13   : > { %s1790_s18 = smov [#allocation2]   ;;  %s1652_s21 = scalar_lea.vmem %s414_s27, 2048 }
  0x14   : > { %p1514_p11 = pneg %p1926_p10  ;;  %s391_s20 = sshll.u32 %s1790_s18, 4  ;;  %s392_s20 = int_to_ptr.vmem [resolvable:$true] %s391_s20 }
  0x15   : > { %p1653_p0 = scmp.ne.s32.totalorder %s414_s27, %s1652_s21  ;;  %p1660_p3 = scmp.lt.s32.totalorder %s414_s27, %s414_s27 }
  0x16   : > { %p1934_p12 = pnand %p2128_p9, %p1514_p11  ;;  %p1661_p4 = scmp.lt.s32.totalorder %s1652_s21, %s1652_s21 }
  0x18   : > { %p1643_p13 = pneg %p1934_p12  ;;  %p1662_p7 = por %p1661_p4, %p1660_p3 }
  0x1a   : > { %p1655_p1 = pnand %p1653_p0, %p1643_p13 }
  0x1c   : > { %p1656_p2 = pneg %p1655_p1 }
  0x1e   : > { %p1663_p8 = pnand %p1662_p7, %p1656_p2 }
  0x20   : > { %1666 = shalt.err (!%p1663_p8)
}
  0x21   : > { %s1791_s26 = smov 128   ;;  %s1792_s22 = smov 8  }
  0x22   : > { %1520 = dma.hbm_to_vmem [thread:$0]  (!%p1934_p12), %s2121_s11, 2048, %s414_s27, [#allocation6], %s1791_s26, %s1791_s26, %s1792_s22  }
  0x23   : > { %s1678_s19 = scalar_lea.vmem %s392_s20, 1024  ;;  %p1686_p9 = scmp.lt.s32.totalorder %s392_s20, %s392_s20 }
  0x24   : > { %p1679_p11 = scmp.ne.s32.totalorder %s392_s20, %s1678_s19  ;;  %p1687_p6 = scmp.lt.s32.totalorder %s1678_s19, %s1678_s19 }
  0x26   : > { %p1681_p0 = pnand %p1679_p11, %p1643_p13  ;;  %p1688_p3 = por %p1687_p6, %p1686_p9 }
  0x28   : > { %p1682_p1 = pneg %p1681_p0 }
  0x2a   : > { %p1689_p2 = pnand %p1688_p3, %p1682_p1 }
  0x2c   : > { %1692 = shalt.err (!%p1689_p2)
}
  0x2d   : > { %s1793_s21 = smov 64   ;;  %s1794_s24 = smov 4  }
  0x2e   : > { %1517 = dma.hbm_to_vmem [thread:$0]  (!%p1934_p12), %s2117_s7, 1024, %s392_s20, [#allocation3], %s1793_s21, %s1793_s21, %s1794_s24  }
  0x2f   : > { %s1795_s15 = smov [#allocation7]  }
  0x30   : > { %s426_s22 = sshll.u32 %s1795_s15, 4  ;;  %s427_s22 = int_to_ptr.vmem [resolvable:$true] %s426_s22 }
  0x31   : > { %s1704_s27 = scalar_lea.vmem %s427_s22, 1024  ;;  %p1712_p9 = scmp.lt.s32.totalorder %s427_s22, %s427_s22 }
  0x32   : > { %p1705_p4 = scmp.ne.s32.totalorder %s427_s22, %s1704_s27  ;;  %p1713_p8 = scmp.lt.s32.totalorder %s1704_s27, %s1704_s27 }
  0x34   : > { %p1707_p7 = pnand %p1705_p4, %p1643_p13  ;;  %p1714_p11 = por %p1713_p8, %p1712_p9 }
  0x36   : > { %p1708_p6 = pneg %p1707_p7 }
  0x38   : > { %p1715_p0 = pnand %p1714_p11, %p1708_p6 }
  0x3a   : > { %1718 = shalt.err (!%p1715_p0)
}
  0x3b   : > { %1523 = dma.hbm_to_vmem [thread:$0]  (!%p1934_p12), %s2122_s12, 1024, %s427_s22, [#allocation6], %s1793_s21, %s1793_s21, %s1794_s24  }
  0x3c   : > { %461 = sbr.rel (%p1926_p10) target bundleno = 1475 (0x5c3), region = 76  ;;  %p2142_p1 = scmp.eq.s32.totalorder (!%p1926_p10), %s1898_s17, 0 }
  0x41   : > { %1762 = dma.done.wait (%p2142_p1), [#allocation3], 1024   ;;  %p2143_p13 = pmov %p2142_p1 }
  0x42   : > { %p2144_p3 = pmov %p2142_p1 }
  0x43   : > { %1764 = vsyncadd (%p2143_p13), [#allocation3], 4294966272 }
  0x44   : > { %1766 = dma.done.wait (%p2144_p3), [#allocation6], 3072   ;;  %p2145_p2 = pmov %p2142_p1 }
  0x45   : > { %p520_p4 = scmp.lt.s32.totalorder %s1898_s17, 1  ;;  %v1796_v0 = vmov 0.0   ;;  %vm1797_vm0 = vmmov 0   ;;  %vm538_vm1 = vcmask 130048   ;;  %v601_v9 = vld [vmem:[%s2112_s2] sm:$0x3] }
  0x46   : > { %1768 = vsyncadd (%p2145_p2), [#allocation6], 4294964224  ;;  %1436 = vmatprep.subr.bf16.mxu1 %v1796_v0  ;;  %1438 = vmatprep.mubr.msk.bf16.mxu1 %vm1797_vm0, %v1796_v0  ;;  %vm606_vm2 = vcmask 1041408   ;;  %v660_v20 = vld [vmem:[%s2113_s3] sm:$0x3]  ;;  %vm602_vm3 = vcmask 31744  }
  0x47   : > { %s521_s29 = scalar_select %p520_p4, %s1898_s17, 1  ;;  %v608_v10 = vsel %vm606_vm2, %v601_v9, 0  ;;  %v665_v25 = vsel %vm606_vm2, %v660_v20, 0  ;;  %v1350_v28 = vld [vmem:[%s2114_s4] ss:$0 sm:$0xff]  ;;  %v1798_v47 = vmov 0  }
  0x48   : > { %v1580_v41 = vld [vmem:[#allocation5 + $0x74] ss:$8 sps:$4 sm:$0xff]   ;;  %v1582_v42 = vld [vmem:[#allocation5 + $0x70] ss:$8 sps:$4 sm:$0xff]   ;;  %v1583_v43 = vld [vmem:[#allocation5 + $0x64] ss:$8 sps:$4 sm:$0xff]   ;;  %924 = vmatprep.mubr.bf16.mxu0 %v1798_v47 }
  0x49   : > { %s1400_s16 = sshll.u32 %s521_s29, 4  ;;  %s1401_s24 = sshll.u32 %s521_s29, 3  ;;  %892 = vmatprep.subr.bf16.mxu0 %v1580_v41  ;;  %v1585_v44 = vld [vmem:[#allocation5 + $0x60] ss:$8 sps:$4 sm:$0xff]   ;;  %v1586_v45 = vld [vmem:[#allocation5 + $0x54] ss:$8 sps:$4 sm:$0xff]  }
  0x4a   : > { %s524_s20 = scalar_lea.vmem %s2110_s0, %s1400_s16  ;;  %s529_s15 = scalar_lea.vmem %s2111_s1, %s1401_s24  ;;  %893 = vmatpush1.bf16.msra.mxu0 %v1582_v42  ;;  %v1588_v46 = vld [vmem:[#allocation5 + $0x50] ss:$8 sps:$4 sm:$0xff]   ;;  %v1589_v48 = vld [vmem:[#allocation5 + $0x44] ss:$8 sps:$4 sm:$0xff]   ;;  %v1591_v49 = vld [vmem:[#allocation5 + $0x40] ss:$8 sps:$4 sm:$0xff]  }
  0x4b   : > { %v533_v1 = vld [vmem:[%s524_s20] sm:$0xff]  ;;  %v534_v2 = vld [vmem:[%s524_s20 + $0x8] sm:$0xff]  ;;  %894 = vmatprep.subr.bf16.mxu0 %v1583_v43  ;;  %v1592_v50 = vld [vmem:[#allocation5 + $0x34] ss:$8 sps:$4 sm:$0xff]   ;;  %s517_s26 = sand.u32 1, %s1779_s30   ;;  %s1404_s25 = sshll.u32 %s1898_s17, 7 }
  0x4c   : > { %v1985_v3 = vld [vmem:[%s529_s15] sm:$0xff]   ;;  %v535_v4 = vpack.c.bf16 %v534_v2, %v533_v1  ;;  %v1594_v51 = vld [vmem:[#allocation5 + $0x30] ss:$8 sps:$4 sm:$0xff]   ;;  %v1598_v54 = vld [vmem:[#allocation5 + $0x14] ss:$8 sps:$4 sm:$0xff]   ;;  %s1342_s29 = sshll.u32 %s517_s26, 3  ;;  %s2066_s15 = scalar_lea.hbm %s2124_s14, %s1404_s25 }
  0x4d   : > { %v536_v5 = vunpack.c.l.bf16 %v1985_v3  ;;  %v537_v6 = vunpack.c.h.bf16 %v1985_v3  ;;  %v1595_v52 = vld [vmem:[#allocation5 + $0x24] ss:$8 sps:$4 sm:$0xff]   ;;  %v1597_v53 = vld [vmem:[#allocation5 + $0x20] ss:$8 sps:$4 sm:$0xff]   ;;  %v1600_v55 = vld [vmem:[#allocation5 + $0x10] ss:$8 sps:$4 sm:$0xff]  }
  0x4e   : > { %1437 = vmatpush3.bf16.msra.mxu1 %v535_v4  ;;  %895 = vmatpush1.bf16.msra.mxu0 %v1585_v44  ;;  %v1601_v56 = vld [vmem:[#allocation5 + $0x4] ss:$8 sps:$4 sm:$0xff]   ;;  %v1603_v57 = vld [vmem:[#allocation5] ss:$8 sps:$4 sm:$0xff]   ;;  %s519_s28 = scalar_lea.vmem [#allocation8], %s1342_s29  ;;  %s2070_s22 = scalar_lea.sflag [#allocation4], %s517_s26 }
  0x4f   : > { %v539_v7 = vsel %vm538_vm1, %v536_v5, 0.0  ;;  %1442 = vmatprep.subr.bf16.mxu1 %v1796_v0  ;;  %v542_v8 = vsel %vm538_vm1, %v537_v6, 0.0  ;;  %896 = vmatprep.subr.bf16.mxu0 %v1586_v45  ;;  %v1352_v63 = vld [vmem:[%s2115_s5] ss:$0 sm:$0xff]  ;;  %s1227_s20 = sshll.u32 %s519_s28, 4  ;;  %s1799_s17 = smov [#allocation8]   ;;  %s2068_s20 = int_to_ptr.vmem [resolvable:$true] %s1227_s20 }
  0x50   : > { %540 = vadd.xlane.f32.xlu0 %v539_v7  ;;  %v1353_v2 = vld [vmem:[%s2116_s6] ss:$0 sm:$0xff]  ;;  %s1719_s27 = scalar_lea.vmem %s2068_s20, 128  ;;  %s1723_s19 = sshll.u32 %s1799_s17, 4  ;;  %s1724_s19 = int_to_ptr.vmem [resolvable:$false] %s1723_s19 }
  0x51   : > { %1439 = vmatmul.mubr.msk.bf16.vlgmr.msra.gmra.mxu1 %vm538_vm1, %v1985_v3  ;;  %p1720_p10 = scmp.ne.s32.totalorder %s2068_s20, %s1719_s27  ;;  %s1725_s29 = scalar_lea.vmem %s1724_s19, 256 }
  0x52   : > { %1444 = vmatprep.mubr.msk.bf16.mxu1 %vm1797_vm0, %v1796_v0  ;;  %1443 = vmatpush3.bf16.msra.mxu1 %v608_v10  ;;  %p1726_p6 = scmp.lt.s32.totalorder %s2068_s20, %s1724_s19  ;;  %p1727_p9 = scmp.lt.s32.totalorder %s1725_s29, %s1719_s27 }
  0x53   : > { %1448 = vmatprep.subr.bf16.mxu1 %v1796_v0  ;;  %897 = vmatpush1.bf16.msra.mxu0 %v1588_v46  ;;  %p1721_p12 = pnand %p1720_p10, %p1915_p5 }
  0x54   : > { %543 = vadd.xlane.f32.xlu0 %v542_v8  ;;  %898 = vmatprep.subr.bf16.mxu0 %v1589_v48  ;;  %v1613_v48 = vld [vmem:[#allocation7 + $0x30] sm:$0xff]   ;;  %p1728_p8 = por %p1727_p9, %p1726_p6 }
  0x55   : > { %p1722_p7 = pneg %p1721_p12 }
  0x57   : > { %899 = vmatpush1.bf16.msra.mxu0 %v1591_v49  ;;  %v1614_v49 = vld [vmem:[#allocation7 + $0x28] sm:$0xff]   ;;  %p1729_p11 = pnand %p1728_p8, %p1722_p7 }
  0x58   : > { %900 = vmatprep.subr.bf16.mxu0 %v1592_v50  ;;  %v1615_v50 = vld [vmem:[#allocation7 + $0x20] sm:$0xff]  }
  0x5b   : > { %901 = vmatpush1.bf16.msra.mxu0 %v1594_v51  ;;  %v1616_v51 = vld [vmem:[#allocation7 + $0x18] sm:$0xff]  }
  0x5c   : > { %902 = vmatprep.subr.bf16.mxu0 %v1595_v52  ;;  %v1617_v52 = vld [vmem:[#allocation7 + $0x10] sm:$0xff]  }
  0x5f   : > { %903 = vmatpush1.bf16.msra.mxu0 %v1597_v53  ;;  %v1618_v53 = vld [vmem:[#allocation7 + $0x8] sm:$0xff]  }
  0x60   : > { %904 = vmatprep.subr.bf16.mxu0 %v1598_v54  ;;  %v1619_v54 = vld [vmem:[#allocation7] sm:$0xff]  }
  0x63   : > { %905 = vmatpush1.bf16.msra.mxu0 %v1600_v55 }
  0x64   : > { %906 = vmatprep.subr.bf16.mxu0 %v1601_v56 }
  0x67   : > { %907 = vmatpush1.bf16.msra.mxu0 %v1603_v57 }
  0x68   : > { %1480 = vmatprep.subr.bf16.mxu0 %v1796_v0 }
  0xd9   : > { %v541_v11 = vpop.xlane.xlu0 %540 }
  0xda   : > { %v545_v13 = vmax.f32 %v541_v11, 1.0 }
  0xdc   : > { %1621 = vrcp.f32 %v545_v13 }
  0xdd   : > { %v544_v12 = vpop.xlane.xlu0 %543 }
  0xde   : > { %v546_v14 = vmax.f32 %v544_v12, 1.0 }
  0xe0   : > { %1623 = vrcp.f32 %v546_v14 }
  0xe9   : > { %v2001_v16 = vpop.eup %1621 }
  0xed   : > { %v2003_v17 = vpop.eup %1623 }
 0x111   : > { %v591_v15 = vpop.f32.mrf.mxu1 }
 0x112   : > { %v598_v21 = vmul.f32 %v2001_v16, %v591_v15 }
 0x113   : > { %v1440_v18 = vpop.f32.mrf.mxu1 }
 0x115   : > { %v594_v19 = vpop.f32.mrf.mxu1 }
 0x116   : > { %v599_v22 = vmul.f32 %v2003_v17, %v594_v19 }
 0x117   : > { %v1441_v23 = vpop.f32.mrf.mxu1 }
 0x118   : > { %v600_v24 = vpack.c.bf16 %v599_v22, %v598_v21  ;;  %v1604_v21 = vld [vmem:[#allocation2 + $0x38] sm:$0xff]   ;;  %v1605_v22 = vld [vmem:[#allocation2 + $0x30] sm:$0xff]   ;;  %v1606_v23 = vld [vmem:[#allocation2 + $0x28] sm:$0xff]  }
 0x11a   : > { %1445 = vmatmul.mubr.msk.bf16.vlgmr.msra.gmra.mxu1 %vm602_vm3, %v600_v24  ;;  %v1607_v24 = vld [vmem:[#allocation2 + $0x20] sm:$0xff]  }
 0x11b   : > { %1449 = vmatpush3.bf16.msra.mxu1 %v665_v25  ;;  %1450 = vmatprep.mubr.msk.bf16.mxu1 %vm1797_vm0, %v1796_v0  ;;  %v1608_v25 = vld [vmem:[#allocation2 + $0x18] sm:$0xff]  }
 0x11c   : > { %1454 = vmatprep.subr.bf16.mxu1 %v1796_v0 }
 0x122   : > { %1451 = vmatmul.mubr.msk.bf16.vlgmr.msra.gmra.mxu1 %vm602_vm3, %v535_v4 }
 0x123   : > { %1456 = vmatprep.mubr.msk.bf16.mxu1 %vm1797_vm0, %v1796_v0 }
 0x1da   : > { %v644_v26 = vpop.f32.mrf.mxu1 }
 0x1db   : > { %v658_v31 = vadd.f32 %v1350_v28, %v644_v26  ;;  %v1610_v26 = vld [vmem:[#allocation2 + $0x8] sm:$0xff]  }
 0x1dc   : > { %v1446_v27 = vpop.f32.mrf.mxu1 }
 0x1dd   : > { %v1611_v27 = vld [vmem:[#allocation2] sm:$0xff]  }
 0x1de   : > { %v647_v29 = vpop.f32.mrf.mxu1 }
 0x1df   : > { %v659_v35 = vadd.f32 %v1350_v28, %v647_v29 }
 0x1e0   : > { %v1447_v30 = vpop.f32.mrf.mxu1 }
 0x1e2   : > { %v701_v32 = vpop.f32.mrf.mxu1 }
 0x1e3   : > { %v708_v33 = vadd.f32 %v701_v32, %v658_v31 }
 0x1e4   : > { %v1452_v34 = vpop.f32.mrf.mxu1 }
 0x1e5   : > { %v710_v36 = vmul.f32 %v708_v33, %v708_v33 }
 0x1e6   : > { %v704_v37 = vpop.f32.mrf.mxu1 }
 0x1e7   : > { %v709_v38 = vadd.f32 %v704_v37, %v659_v35  ;;  %712 = vadd.xlane.f32.xlu1 %v710_v36  ;;  %v1612_v35 = vld [vmem:[#allocation7 + $0x38] sm:$0xff]   ;;  %v1381_v37 = vld [vmem:[%s2118_s8] ss:$0 sm:$0xff] }
 0x1e8   : > { %v1453_v39 = vpop.f32.mrf.mxu1 }
 0x1e9   : > { %v711_v40 = vmul.f32 %v709_v38, %v709_v38 }
 0x1eb   : > { %714 = vadd.xlane.f32.xlu1 %v711_v40 }
 0x270   : > { %v713_v58 = vpop.xlane.xlu1 %712 }
 0x271   : > { %v716_v59 = vmax.f32 %v713_v58, 1e-24 }
 0x273   : > { %1625 = vrsqrt.f32 %v716_v59 }
 0x274   : > { %v715_v60 = vpop.xlane.xlu1 %714 }
 0x275   : > { %v717_v61 = vmax.f32 %v715_v60, 1e-24  ;;  %v1382_v60 = vld [vmem:[%s2119_s9] ss:$0 sm:$0xff] }
 0x277   : > { %1627 = vrsqrt.f32 %v717_v61 }
 0x280   : > { %v1626_v62 = vpop.eup %1625 }
 0x281   : > { %v720_v1 = vmul.f32 %v1626_v62, %v708_v33 }
 0x283   : > { %v729_v4 = vmul.f32 %v1352_v63, %v720_v1 }
 0x284   : > { %v1628_v5 = vpop.eup %1627 }
 0x285   : > { %v738_v6 = vadd.f32 %v1353_v2, %v729_v4  ;;  %v721_v7 = vmul.f32 %v1628_v5, %v709_v38 }
 0x287   : > { %v1354_v8 = vmul.f32 -1.442695, %v738_v6  ;;  %v730_v9 = vmul.f32 %v1352_v63, %v721_v7 }
 0x289   : > { %1629 = vpow2.f32 %v1354_v8  ;;  %v739_v10 = vadd.f32 %v1353_v2, %v730_v9 }
 0x28b   : > { %v1355_v11 = vmul.f32 -1.442695, %v739_v10 }
 0x28d   : > { %1631 = vpow2.f32 %v1355_v11 }
 0x296   : > { %v1630_v12 = vpop.eup %1629 }
 0x297   : > { %v746_v13 = vadd.f32 1.0, %v1630_v12  ;;  %v1392_v12 = vld [vmem:[%s2123_s13] ss:$0 sm:$0xff] }
 0x299   : > { %1633 = vrcp.f32 %v746_v13 }
 0x29a   : > { %v1632_v14 = vpop.eup %1631 }
 0x29b   : > { %v747_v15 = vadd.f32 1.0, %v1632_v14 }
 0x29d   : > { %1635 = vrcp.f32 %v747_v15 }
 0x2a6   : > { %v1634_v18 = vpop.eup %1633 }
 0x2aa   : > { %v1636_v19 = vpop.eup %1635 }
 0x2ab   : > { %v752_v20 = vpack.c.bf16 %v1636_v19, %v1634_v18 }
 0x2ad   : > { %1455 = vmatpush3.bf16.msra.mxu1 %v752_v20  ;;  %925 = vmatmul.mubr.bf16.vlgmr.msra.gmra.mxu0 %v752_v20 }
 0x2ae   : > { %1460 = vmatprep.subr.bf16.mxu1 %v1796_v0  ;;  %1496 = vmatprep.mubr.msk.bf16.mxu0 %vm1797_vm0, %v1796_v0 }
 0x2af   : > { %1481 = vmatpush3.bf16.msra.mxu0 %v1612_v35 }
 0x2b0   : > { %1457 = vmatmul.mubr.msk.bf16.vlgmr.msra.gmra.mxu1 %vm538_vm1, %v1985_v3  ;;  %v1609_v3 = vld [vmem:[#allocation2 + $0x10] sm:$0xff]   ;;  %1482 = vmatprep.subr.bf16.mxu0 %v1796_v0 }
 0x2b1   : > { %1461 = vmatpush3.bf16.msra.mxu1 %v1604_v21  ;;  %1476 = vmatprep.mubr.msk.bf16.mxu1 %vm1797_vm0, %v1796_v0 }
 0x2b2   : > { %1462 = vmatprep.subr.bf16.mxu1 %v1796_v0 }
 0x2b3   : > { %1483 = vmatpush3.bf16.msra.mxu0 %v1613_v48 }
 0x2b4   : > { %1484 = vmatprep.subr.bf16.mxu0 %v1796_v0 }
 0x2b5   : > { %1463 = vmatpush3.bf16.msra.mxu1 %v1605_v22 }
 0x2b6   : > { %1464 = vmatprep.subr.bf16.mxu1 %v1796_v0 }
 0x2b7   : > { %1485 = vmatpush3.bf16.msra.mxu0 %v1614_v49 }
 0x2b8   : > { %1486 = vmatprep.subr.bf16.mxu0 %v1796_v0 }
 0x2b9   : > { %1465 = vmatpush3.bf16.msra.mxu1 %v1606_v23 }
 0x2ba   : > { %1466 = vmatprep.subr.bf16.mxu1 %v1796_v0 }
 0x2bb   : > { %1487 = vmatpush3.bf16.msra.mxu0 %v1615_v50 }
 0x2bc   : > { %1488 = vmatprep.subr.bf16.mxu0 %v1796_v0 }
 0x2bd   : > { %1467 = vmatpush3.bf16.msra.mxu1 %v1607_v24 }
 0x2be   : > { %1468 = vmatprep.subr.bf16.mxu1 %v1796_v0 }
 0x2bf   : > { %1489 = vmatpush3.bf16.msra.mxu0 %v1616_v51 }
 0x2c0   : > { %1490 = vmatprep.subr.bf16.mxu0 %v1796_v0 }
 0x2c1   : > { %1469 = vmatpush3.bf16.msra.mxu1 %v1608_v25 }
 0x2c2   : > { %1470 = vmatprep.subr.bf16.mxu1 %v1796_v0 }
 0x2c3   : > { %1491 = vmatpush3.bf16.msra.mxu0 %v1617_v52 }
 0x2c4   : > { %1492 = vmatprep.subr.bf16.mxu0 %v1796_v0 }
 0x2c5   : > { %1471 = vmatpush3.bf16.msra.mxu1 %v1609_v3 }
 0x2c6   : > { %1472 = vmatprep.subr.bf16.mxu1 %v1796_v0 }
 0x2c7   : > { %1493 = vmatpush3.bf16.msra.mxu0 %v1618_v53 }
 0x2c8   : > { %1494 = vmatprep.subr.bf16.mxu0 %v1796_v0 }
 0x2c9   : > { %1473 = vmatpush3.bf16.msra.mxu1 %v1610_v26 }
 0x2ca   : > { %1474 = vmatprep.subr.bf16.mxu1 %v1796_v0  ;;  %v1383_v0 = vld [vmem:[%s2120_s10] ss:$0 sm:$0xff] }
 0x2cb   : > { %1495 = vmatpush3.bf16.msra.mxu0 %v1619_v54 }
 0x2cd   : > { %1475 = vmatpush3.bf16.msra.mxu1 %v1611_v27 }
 0x36d   : > { %v926_v36 = vpop.f32.mrf.mxu0 }
 0x36f   : > { %v928_v40 = vpop.f32.mrf.mxu0 }
 0x370   : > { %v787_v28 = vpop.f32.mrf.mxu1 }
 0x371   : > { %v794_v31 = vmul.f32 %v2001_v16, %v787_v28  ;;  %v930_v44 = vpop.f32.mrf.mxu0 }
 0x372   : > { %v1458_v29 = vpop.f32.mrf.mxu1 }
 0x373   : > { %v932_v9 = vpop.f32.mrf.mxu0 }
 0x374   : > { %v790_v30 = vpop.f32.mrf.mxu1 }
 0x375   : > { %v795_v32 = vmul.f32 %v2003_v17, %v790_v30 }
 0x376   : > { %v1459_v33 = vpop.f32.mrf.mxu1 }
 0x377   : > { %v935_v34 = vpack.c.bf16 %v795_v32, %v794_v31 }
 0x379   : > { %1477 = vmatmul.mubr.bf16.vlgmr.msra.gmra.mxu1 %v935_v34 }
 0x439   : > { %v1034_v38 = vpop.f32.mrf.mxu1 }
 0x43a   : > { %v1048_v39 = vadd.f32 %v1381_v37, %v1034_v38 }
 0x43b   : > { %v1478_v41 = vpop.f32.mrf.mxu1 }
 0x43c   : > { %v1050_v42 = vadd.f32 %v1048_v39, %v926_v36 }
 0x43d   : > { %v1037_v16 = vpop.f32.mrf.mxu1 }
 0x43e   : > { %v1049_v43 = vadd.f32 %v1381_v37, %v1037_v16  ;;  %v1052_v17 = vmul.f32 %v1050_v42, %v1050_v42 }
 0x43f   : > { %v1479_v45 = vpop.f32.mrf.mxu1 }
 0x440   : > { %v1051_v46 = vadd.f32 %v1049_v43, %v930_v44  ;;  %1054 = vadd.xlane.f32.xlu0 %v1052_v17 }
 0x442   : > { %v1053_v47 = vmul.f32 %v1051_v46, %v1051_v46 }
 0x444   : > { %1056 = vadd.xlane.f32.xlu1 %v1053_v47 }
 0x4c9   : > { %v1055_v55 = vpop.xlane.xlu0 %1054 }
 0x4ca   : > { %v1058_v56 = vmax.f32 %v1055_v55, 1e-24 }
 0x4cc   : > { %1637 = vrsqrt.f32 %v1058_v56 }
 0x4cd   : > { %v1057_v57 = vpop.xlane.xlu1 %1056 }
 0x4ce   : > { %v1059_v58 = vmax.f32 %v1057_v57, 1e-24 }
 0x4d0   : > { %1639 = vrsqrt.f32 %v1059_v58 }
 0x4d9   : > { %v1638_v59 = vpop.eup %1637 }
 0x4da   : > { %v1062_v61 = vmul.f32 %v1638_v59, %v1050_v42 }
 0x4dc   : > { %v1071_v62 = vmul.f32 %v1382_v60, %v1062_v61 }
 0x4dd   : > { %v1640_v63 = vpop.eup %1639 }
 0x4de   : > { %v1063_v1 = vmul.f32 %v1640_v63, %v1051_v46  ;;  %v1080_v4 = vadd.f32 %v1383_v0, %v1071_v62 }
 0x4e0   : > { %v1072_v2 = vmul.f32 %v1382_v60, %v1063_v1  ;;  %v1082_v6 = vmax.f32 %v1080_v4, 0.0 }
 0x4e2   : > { %v1081_v5 = vadd.f32 %v1383_v0, %v1072_v2 }
 0x4e4   : > { %v1083_v7 = vmax.f32 %v1081_v5, 0.0 }
 0x4e6   : > { %v1084_v8 = vpack.c.bf16 %v1083_v7, %v1082_v6 }
 0x4e8   : > { %1497 = vmatmul.mubr.bf16.vlgmr.msra.gmra.mxu0 %v1084_v8 }
 0x5a8   : > { %v1183_v10 = vpop.f32.mrf.mxu0 }
 0x5a9   : > { %v1190_v11 = vadd.f32 %v1183_v10, %v928_v40 }
 0x5aa   : > { %v1498_v13 = vpop.f32.mrf.mxu0 }
 0x5ab   : > { %v1199_v15 = vadd.f32 %v1392_v12, %v1190_v11 }
 0x5ac   : > { %v1186_v14 = vpop.f32.mrf.mxu0 }
 0x5ad   : > { %v1191_v18 = vadd.f32 %v1186_v14, %v932_v9  ;;  %v1201_v21 = vmax.f32 %v1199_v15, 0.0 }
 0x5ae   : > { %v1499_v19 = vpop.f32.mrf.mxu0 }
 0x5af   : > { %v1200_v20 = vadd.f32 %v1392_v12, %v1191_v18 }
 0x5b1   : > { %v1202_v22 = vmax.f32 %v1200_v20, 0.0 }
 0x5b3   : > { %v1408_v23 = vpack.c.bf16 %v1202_v22, %v1201_v21 }
 0x5b5   : > { %1409 = vst [vmem:[%s519_s28] sm:$0xff] %v1408_v23  }
 0x5b6   : > { %1732 = shalt.err (!%p1729_p11)
}
 0x5b7   : > { %s1733_s26 = scalar_lea.hbm %s2066_s15, 128  ;;  %s1737_s25 = scalar_lea.hbm %s2124_s14, 256 }
 0x5b8   : > { %p1734_p0 = scmp.ne.s32.totalorder %s2066_s15, %s1733_s26  ;;  %p1738_p3 = scmp.lt.s32.totalorder %s2066_s15, %s2124_s14 }
 0x5b9   : > { %p1739_p2 = scmp.lt.s32.totalorder %s1737_s25, %s1733_s26 }
 0x5ba   : > { %p1735_p1 = pnand %p1734_p0, %p1915_p5 }
 0x5bb   : > { %p1740_p4 = por %p1739_p2, %p1738_p3 }
 0x5bc   : > { %p1736_p13 = pneg %p1735_p1 }
 0x5be   : > { %p1741_p10 = pnand %p1740_p4, %p1736_p13 }
 0x5c0   : > { %1744 = shalt.err (!%p1741_p10)
}
 0x5c1   : > { %s1800_s21 = smov 64   ;;  %s1801_s27 = smov 4  }
 0x5c2   : > { %1512 = dma.vmem_to_hbm [thread:$0]  (%p1915_p5), %s2068_s20, 128, %s2066_s15, %s2070_s22, %s1800_s21, %s1800_s21, %s1801_s27  }
 0x5c3 PF: > { %s2146_s17 = sld [smem:[#allocation14_spill]] }
 0x5c4   : > { %s2147_s19 = sld [smem:[#allocation12_spill]] }
 0x5c5   : > { %s2148_s29 = sld [smem:[#allocation17_spill]] }
 0x5c9   : > { %p1534_p12 = scmp.ge.s32.totalorder %s2146_s17, 2 }
 0x5ca   : > { %s1242_s16 = sand.u32 1, %s2147_s19  }
 0x5cb   : > { %p2149_p7 = scmp.ne.s32.totalorder %s2148_s29, 0  ;;  %s1243_s26 = scalar_lea.sflag [#allocation4], %s1242_s16 }
 0x5cd   : > { %p1525_p6 = pnand %p1534_p12, %p2149_p7 }
 0x5cf   : > { %p1526_p9 = pneg %p1525_p6 }
 0x5d1   : > { %1770 = dma.done.wait (%p1526_p9), %s1243_s26, 128  }
 0x5d2   : > { %1772 = vsyncadd (%p1526_p9), %s1243_s26, 4294967168  ;;  %s2150_s16 = sld [smem:[#allocation15_spill]]  ;;  %s2153_s29 = smov %s1779_s30 }
 0x5d3   : > { %s2151_s24 = sld [smem:[#allocation13_spill]] }
 0x5d4   : > { %s2152_s15 = sld [smem:[#allocation16_spill]] }
 0x5d8   : > { %p26_p8 = scmp.ge.s32.totalorder %s2150_s16, 4  }
 0x5d9   : > { %s2154_s30 = smov %s2151_s24 }
 0x5da   :  { %28 = sbr.rel (!%p26_p8) target bundleno = 5 (0x5), region = 127 }
 0x5df   :  { %1248 = vsyncpa [#allocation3], 1 }
 0x5e0   :  { %1250 = vsyncpa [#allocation3 + $0x1], 1 }
 0x5e1   :  { %1251 = vsyncpa [#allocation6], 1 }
 0x5e2   :  { %1252 = vsyncpa [#allocation4], 1 }
 0x5e3   :  { %1254 = vsyncpa [#allocation4 + $0x1], 1 }

// kernel: tpu_custom_call.1
= control target key start
LH: loop header
LB: loop body
LE: loop exit
PB: predicated region body
PF: predicated region fallthrough
CT: control target
= control target key end

     0   :  { %19 = vsyncpa [#allocation3], 0  ;;  %s2110_s0 = inlined_call_operand.vmem [shape: f32[2,16,4], index: 0, kind: input, shape index: {}]   ;;  %s2111_s1 = inlined_call_operand.vmem [shape: bf16[2,16,16], index: 1, kind: input, shape index: {}]   ;;  %s2112_s2 = inlined_call_operand.vmem [shape: bf16[4,128], index: 2, kind: input, shape index: {}]   ;;  %s2113_s3 = inlined_call_operand.vmem [shape: bf16[4,128], index: 3, kind: input, shape index: {}]   ;;  %s2114_s4 = inlined_call_operand.vmem [shape: f32[1,128], index: 4, kind: input, shape index: {}]   ;;  %s2115_s5 = inlined_call_operand.vmem [shape: f32[1,128], index: 5, kind: input, shape index: {}]   ;;  %s2116_s6 = inlined_call_operand.vmem [shape: f32[1,128], index: 6, kind: input, shape index: {}]   ;;  %s2117_s7 = inlined_call_operand.hbm [shape: bf16[128,128], index: 7, kind: input, shape index: {}]   ;;  %s2118_s8 = inlined_call_operand.vmem [shape: f32[1,128], index: 8, kind: input, shape index: {}]   ;;  %s2119_s9 = inlined_call_operand.vmem [shape: f32[1,128], index: 9, kind: input, shape index: {}]   ;;  %s2120_s10 = inlined_call_operand.vmem [shape: f32[1,128], index: 10, kind: input, shape index: {}]   ;;  %s2121_s11 = inlined_call_operand.hbm [shape: bf16[128,256], index: 11, kind: input, shape index: {}]   ;;  %s2122_s12 = inlined_call_operand.hbm [shape: bf16[128,128], index: 12, kind: input, shape index: {}]   ;;  %s2123_s13 = inlined_call_operand.vmem [shape: f32[1,128], index: 13, kind: input, shape index: {}]   ;;  %s2124_s14 = inlined_call_operand.hbm [shape: bf16[2,16,128], index: 14, kind: output, shape index: {}]  }
   0x1   :  { %20 = vsyncpa [#allocation6], 0 }
   0x2   :  { %21 = vsyncpa [#allocation4], 0 }
   0x3   :  { %23 = vsyncpa [#allocation4 + $0x1], 0  ;;  %s1877_s29 = smov 0   ;;  %s1879_s30 = smov 0  }
   0x4   :  { %s1881_s15 = smov 0   ;;  %s1883_s16 = smov 0  }
   0x5 LB: > { %2132 = sst [smem:[#allocation12_spill]] %s1775_s29  ;;  %s1898_s17 = sadd.s32 4294967295, %s1787_s16   ;;  %s1787_s16 = sphi %s1883_s16, %s2150_s16   ;;  %s1783_s15 = sphi %s1881_s15, %s2152_s15   ;;  %s1779_s30 = sphi %s1879_s30, %s2154_s30   ;;  %s1775_s29 = sphi %s1877_s29, %s2153_s29  }
   0x6   : > { %2133 = sst [smem:[#allocation13_spill]] %s1783_s15  ;;  %s1332_s18 = sadd.s32 4294967294, %s1787_s16  }
   0x7   : > { %2134 = sst [smem:[#allocation14_spill]] %s1787_s16  ;;  %s1902_s19 = sadd.s32 1, %s1787_s16  }
   0x8   : > { %2135 = sst [smem:[#allocation15_spill]] %s1902_s19  ;;  %s340_s20 = sadd.s32 1, %s1783_s15 }
   0x9   : > { %s337_s21 = ssub.s32 %s1787_s16, %s1902_s19  ;;  %p350_p0 = scmp.ne.s32.totalorder %s1783_s15, %s1779_s30 }
   0xa   : > { %p338_p1 = scmp.eq.s32.totalorder %s337_s21, 0  ;;  %p351_p2 = scmp.eq.s32.totalorder %s1898_s17, 1 }
   0xb   : > { %p356_p3 = scmp.ne.s32.totalorder %s1779_s30, %s1775_s29  ;;  %p357_p4 = scmp.eq.s32.totalorder %s1332_s18, 1 }
   0xc   : > { %s1913_s22 = scalar_select %p338_p1, %s1783_s15, %s340_s20  }
   0xd   : > { %p1915_p5 = por %p351_p2, %p350_p0  ;;  %p1919_p6 = por %p357_p4, %p356_p3 }
   0xe   : > { %2136 = sst [smem:[#allocation16_spill]] %s1913_s22  ;;  %p1333_p7 = scmp.ge.s32.totalorder %s1787_s16, 1 }
   0xf   : > { %s2138_s24 = scalar_select %p1919_p6, 1, 0 }
  0x10   : > { %p364_p8 = scmp.lt.s32.totalorder %s1787_s16, 3  ;;  %p2128_p9 = scmp.eq.s32.totalorder %s1898_s17, 0 }
  0x11   : > { %2139 = sst [smem:[#allocation17_spill]] %s2138_s24  ;;  %s1789_s26 = smov [#allocation5]  }
  0x12   : > { %p1926_p10 = pnand %p1333_p7, %p364_p8  ;;  %s413_s27 = sshll.u32 %s1789_s26, 4  ;;  %s414_s27 = int_to_ptr.vmem [resolvable:$true] %s413_s27 }
  0x13   : > { %s1790_s18 = smov [#allocation2]   ;;  %s1652_s21 = scalar_lea.vmem %s414_s27, 2048 }
  0x14   : > { %p1514_p11 = pneg %p1926_p10  ;;  %s391_s20 = sshll.u32 %s1790_s18, 4  ;;  %s392_s20 = int_to_ptr.vmem [resolvable:$true] %s391_s20 }
  0x15   : > { %p1653_p0 = scmp.ne.s32.totalorder %s414_s27, %s1652_s21  ;;  %p1660_p3 = scmp.lt.s32.totalorder %s414_s27, %s414_s27 }
  0x16   : > { %p1934_p12 = pnand %p2128_p9, %p1514_p11  ;;  %p1661_p4 = scmp.lt.s32.totalorder %s1652_s21, %s1652_s21 }
  0x18   : > { %p1643_p13 = pneg %p1934_p12  ;;  %p1662_p7 = por %p1661_p4, %p1660_p3 }
  0x1a   : > { %p1655_p1 = pnand %p1653_p0, %p1643_p13 }
  0x1c   : > { %p1656_p2 = pneg %p1655_p1 }
  0x1e   : > { %p1663_p8 = pnand %p1662_p7, %p1656_p2 }
  0x20   : > { %1666 = shalt.err (!%p1663_p8)
}
  0x21   : > { %s1791_s26 = smov 128   ;;  %s1792_s22 = smov 8  }
  0x22   : > { %1520 = dma.hbm_to_vmem [thread:$0]  (!%p1934_p12), %s2121_s11, 2048, %s414_s27, [#allocation6], %s1791_s26, %s1791_s26, %s1792_s22  }
  0x23   : > { %s1678_s19 = scalar_lea.vmem %s392_s20, 1024  ;;  %p1686_p9 = scmp.lt.s32.totalorder %s392_s20, %s392_s20 }
  0x24   : > { %p1679_p11 = scmp.ne.s32.totalorder %s392_s20, %s1678_s19  ;;  %p1687_p6 = scmp.lt.s32.totalorder %s1678_s19, %s1678_s19 }
  0x26   : > { %p1681_p0 = pnand %p1679_p11, %p1643_p13  ;;  %p1688_p3 = por %p1687_p6, %p1686_p9 }
  0x28   : > { %p1682_p1 = pneg %p1681_p0 }
  0x2a   : > { %p1689_p2 = pnand %p1688_p3, %p1682_p1 }
  0x2c   : > { %1692 = shalt.err (!%p1689_p2)
}
  0x2d   : > { %s1793_s21 = smov 64   ;;  %s1794_s24 = smov 4  }
  0x2e   : > { %1517 = dma.hbm_to_vmem [thread:$0]  (!%p1934_p12), %s2117_s7, 1024, %s392_s20, [#allocation3], %s1793_s21, %s1793_s21, %s1794_s24  }
  0x2f   : > { %s1795_s15 = smov [#allocation7]  }
  0x30   : > { %s426_s22 = sshll.u32 %s1795_s15, 4  ;;  %s427_s22 = int_to_ptr.vmem [resolvable:$true] %s426_s22 }
  0x31   : > { %s1704_s27 = scalar_lea.vmem %s427_s22, 1024  ;;  %p1712_p9 = scmp.lt.s32.totalorder %s427_s22, %s427_s22 }
  0x32   : > { %p1705_p4 = scmp.ne.s32.totalorder %s427_s22, %s1704_s27  ;;  %p1713_p8 = scmp.lt.s32.totalorder %s1704_s27, %s1704_s27 }
  0x34   : > { %p1707_p7 = pnand %p1705_p4, %p1643_p13  ;;  %p1714_p11 = por %p1713_p8, %p1712_p9 }
  0x36   : > { %p1708_p6 = pneg %p1707_p7 }
  0x38   : > { %p1715_p0 = pnand %p1714_p11, %p1708_p6 }
  0x3a   : > { %1718 = shalt.err (!%p1715_p0)
}
  0x3b   : > { %1523 = dma.hbm_to_vmem [thread:$0]  (!%p1934_p12), %s2122_s12, 1024, %s427_s22, [#allocation6], %s1793_s21, %s1793_s21, %s1794_s24  }
  0x3c   : > { %461 = sbr.rel (%p1926_p10) target bundleno = 1475 (0x5c3), region = 76  ;;  %p2142_p1 = scmp.eq.s32.totalorder (!%p1926_p10), %s1898_s17, 0 }
  0x41   : > { %1762 = dma.done.wait (%p2142_p1), [#allocation3], 1024   ;;  %p2143_p13 = pmov %p2142_p1 }
  0x42   : > { %p2144_p3 = pmov %p2142_p1 }
  0x43   : > { %1764 = vsyncadd (%p2143_p13), [#allocation3], 4294966272 }
  0x44   : > { %1766 = dma.done.wait (%p2144_p3), [#allocation6], 3072   ;;  %p2145_p2 = pmov %p2142_p1 }
  0x45   : > { %p520_p4 = scmp.lt.s32.totalorder %s1898_s17, 1  ;;  %v1796_v0 = vmov 0.0   ;;  %vm1797_vm0 = vmmov 0   ;;  %vm538_vm1 = vcmask 130048   ;;  %v601_v9 = vld [vmem:[%s2112_s2] sm:$0x3] }
  0x46   : > { %1768 = vsyncadd (%p2145_p2), [#allocation6], 4294964224  ;;  %1436 = vmatprep.subr.bf16.mxu1 %v1796_v0  ;;  %1438 = vmatprep.mubr.msk.bf16.mxu1 %vm1797_vm0, %v1796_v0  ;;  %vm606_vm2 = vcmask 1041408   ;;  %v660_v20 = vld [vmem:[%s2113_s3] sm:$0x3]  ;;  %vm602_vm3 = vcmask 31744  }
  0x47   : > { %s521_s29 = scalar_select %p520_p4, %s1898_s17, 1  ;;  %v608_v10 = vsel %vm606_vm2, %v601_v9, 0  ;;  %v665_v25 = vsel %vm606_vm2, %v660_v20, 0  ;;  %v1350_v28 = vld [vmem:[%s2114_s4] ss:$0 sm:$0xff]  ;;  %v1798_v47 = vmov 0  }
  0x48   : > { %v1580_v41 = vld [vmem:[#allocation5 + $0x74] ss:$8 sps:$4 sm:$0xff]   ;;  %v1582_v42 = vld [vmem:[#allocation5 + $0x70] ss:$8 sps:$4 sm:$0xff]   ;;  %v1583_v43 = vld [vmem:[#allocation5 + $0x64] ss:$8 sps:$4 sm:$0xff]   ;;  %924 = vmatprep.mubr.bf16.mxu0 %v1798_v47 }
  0x49   : > { %s1400_s16 = sshll.u32 %s521_s29, 4  ;;  %s1401_s24 = sshll.u32 %s521_s29, 3  ;;  %892 = vmatprep.subr.bf16.mxu0 %v1580_v41  ;;  %v1585_v44 = vld [vmem:[#allocation5 + $0x60] ss:$8 sps:$4 sm:$0xff]   ;;  %v1586_v45 = vld [vmem:[#allocation5 + $0x54] ss:$8 sps:$4 sm:$0xff]  }
  0x4a   : > { %s524_s20 = scalar_lea.vmem %s2110_s0, %s1400_s16  ;;  %s529_s15 = scalar_lea.vmem %s2111_s1, %s1401_s24  ;;  %893 = vmatpush1.bf16.msra.mxu0 %v1582_v42  ;;  %v1588_v46 = vld [vmem:[#allocation5 + $0x50] ss:$8 sps:$4 sm:$0xff]   ;;  %v1589_v48 = vld [vmem:[#allocation5 + $0x44] ss:$8 sps:$4 sm:$0xff]   ;;  %v1591_v49 = vld [vmem:[#allocation5 + $0x40] ss:$8 sps:$4 sm:$0xff]  }
  0x4b   : > { %v533_v1 = vld [vmem:[%s524_s20] sm:$0xff]  ;;  %v534_v2 = vld [vmem:[%s524_s20 + $0x8] sm:$0xff]  ;;  %894 = vmatprep.subr.bf16.mxu0 %v1583_v43  ;;  %v1592_v50 = vld [vmem:[#allocation5 + $0x34] ss:$8 sps:$4 sm:$0xff]   ;;  %s517_s26 = sand.u32 1, %s1779_s30   ;;  %s1404_s25 = sshll.u32 %s1898_s17, 7 }
  0x4c   : > { %v1985_v3 = vld [vmem:[%s529_s15] sm:$0xff]   ;;  %v535_v4 = vpack.c.bf16 %v534_v2, %v533_v1  ;;  %v1594_v51 = vld [vmem:[#allocation5 + $0x30] ss:$8 sps:$4 sm:$0xff]   ;;  %v1598_v54 = vld [vmem:[#allocation5 + $0x14] ss:$8 sps:$4 sm:$0xff]   ;;  %s1342_s29 = sshll.u32 %s517_s26, 3  ;;  %s2066_s15 = scalar_lea.hbm %s2124_s14, %s1404_s25 }
  0x4d   : > { %v536_v5 = vunpack.c.l.bf16 %v1985_v3  ;;  %v537_v6 = vunpack.c.h.bf16 %v1985_v3  ;;  %v1595_v52 = vld [vmem:[#allocation5 + $0x24] ss:$8 sps:$4 sm:$0xff]   ;;  %v1597_v53 = vld [vmem:[#allocation5 + $0x20] ss:$8 sps:$4 sm:$0xff]   ;;  %v1600_v55 = vld [vmem:[#allocation5 + $0x10] ss:$8 sps:$4 sm:$0xff]  }
  0x4e   : > { %1437 = vmatpush3.bf16.msra.mxu1 %v535_v4  ;;  %895 = vmatpush1.bf16.msra.mxu0 %v1585_v44  ;;  %v1601_v56 = vld [vmem:[#allocation5 + $0x4] ss:$8 sps:$4 sm:$0xff]   ;;  %v1603_v57 = vld [vmem:[#allocation5] ss:$8 sps:$4 sm:$0xff]   ;;  %s519_s28 = scalar_lea.vmem [#allocation8], %s1342_s29  ;;  %s2070_s22 = scalar_lea.sflag [#allocation4], %s517_s26 }
  0x4f   : > { %v539_v7 = vsel %vm538_vm1, %v536_v5, 0.0  ;;  %1442 = vmatprep.subr.bf16.mxu1 %v1796_v0  ;;  %v542_v8 = vsel %vm538_vm1, %v537_v6, 0.0  ;;  %896 = vmatprep.subr.bf16.mxu0 %v1586_v45  ;;  %v1352_v63 = vld [vmem:[%s2115_s5] ss:$0 sm:$0xff]  ;;  %s1227_s20 = sshll.u32 %s519_s28, 4  ;;  %s1799_s17 = smov [#allocation8]   ;;  %s2068_s20 = int_to_ptr.vmem [resolvable:$true] %s1227_s20 }
  0x50   : > { %540 = vadd.xlane.f32.xlu0 %v539_v7  ;;  %v1353_v2 = vld [vmem:[%s2116_s6] ss:$0 sm:$0xff]  ;;  %s1719_s27 = scalar_lea.vmem %s2068_s20, 128  ;;  %s1723_s19 = sshll.u32 %s1799_s17, 4  ;;  %s1724_s19 = int_to_ptr.vmem [resolvable:$false] %s1723_s19 }
  0x51   : > { %1439 = vmatmul.mubr.msk.bf16.vlgmr.msra.gmra.mxu1 %vm538_vm1, %v1985_v3  ;;  %p1720_p10 = scmp.ne.s32.totalorder %s2068_s20, %s1719_s27  ;;  %s1725_s29 = scalar_lea.vmem %s1724_s19, 256 }
  0x52   : > { %1444 = vmatprep.mubr.msk.bf16.mxu1 %vm1797_vm0, %v1796_v0  ;;  %1443 = vmatpush3.bf16.msra.mxu1 %v608_v10  ;;  %p1726_p6 = scmp.lt.s32.totalorder %s2068_s20, %s1724_s19  ;;  %p1727_p9 = scmp.lt.s32.totalorder %s1725_s29, %s1719_s27 }
  0x53   : > { %1448 = vmatprep.subr.bf16.mxu1 %v1796_v0  ;;  %897 = vmatpush1.bf16.msra.mxu0 %v1588_v46  ;;  %p1721_p12 = pnand %p1720_p10, %p1915_p5 }
  0x54   : > { %543 = vadd.xlane.f32.xlu0 %v542_v8  ;;  %898 = vmatprep.subr.bf16.mxu0 %v1589_v48  ;;  %v1613_v48 = vld [vmem:[#allocation7 + $0x30] sm:$0xff]   ;;  %p1728_p8 = por %p1727_p9, %p1726_p6 }
  0x55   : > { %p1722_p7 = pneg %p1721_p12 }
  0x57   : > { %899 = vmatpush1.bf16.msra.mxu0 %v1591_v49  ;;  %v1614_v49 = vld [vmem:[#allocation7 + $0x28] sm:$0xff]   ;;  %p1729_p11 = pnand %p1728_p8, %p1722_p7 }
  0x58   : > { %900 = vmatprep.subr.bf16.mxu0 %v1592_v50  ;;  %v1615_v50 = vld [vmem:[#allocation7 + $0x20] sm:$0xff]  }
  0x5b   : > { %901 = vmatpush1.bf16.msra.mxu0 %v1594_v51  ;;  %v1616_v51 = vld [vmem:[#allocation7 + $0x18] sm:$0xff]  }
  0x5c   : > { %902 = vmatprep.subr.bf16.mxu0 %v1595_v52  ;;  %v1617_v52 = vld [vmem:[#allocation7 + $0x10] sm:$0xff]  }
  0x5f   : > { %903 = vmatpush1.bf16.msra.mxu0 %v1597_v53  ;;  %v1618_v53 = vld [vmem:[#allocation7 + $0x8] sm:$0xff]  }
  0x60   : > { %904 = vmatprep.subr.bf16.mxu0 %v1598_v54  ;;  %v1619_v54 = vld [vmem:[#allocation7] sm:$0xff]  }
  0x63   : > { %905 = vmatpush1.bf16.msra.mxu0 %v1600_v55 }
  0x64   : > { %906 = vmatprep.subr.bf16.mxu0 %v1601_v56 }
  0x67   : > { %907 = vmatpush1.bf16.msra.mxu0 %v1603_v57 }
  0x68   : > { %1480 = vmatprep.subr.bf16.mxu0 %v1796_v0 }
  0xd9   : > { %v541_v11 = vpop.xlane.xlu0 %540 }
  0xda   : > { %v545_v13 = vmax.f32 %v541_v11, 1.0 }
  0xdc   : > { %1621 = vrcp.f32 %v545_v13 }
  0xdd   : > { %v544_v12 = vpop.xlane.xlu0 %543 }
  0xde   : > { %v546_v14 = vmax.f32 %v544_v12, 1.0 }
  0xe0   : > { %1623 = vrcp.f32 %v546_v14 }
  0xe9   : > { %v2001_v16 = vpop.eup %1621 }
  0xed   : > { %v2003_v17 = vpop.eup %1623 }
 0x111   : > { %v591_v15 = vpop.f32.mrf.mxu1 }
 0x112   : > { %v598_v21 = vmul.f32 %v2001_v16, %v591_v15 }
 0x113   : > { %v1440_v18 = vpop.f32.mrf.mxu1 }
 0x115   : > { %v594_v19 = vpop.f32.mrf.mxu1 }
 0x116   : > { %v599_v22 = vmul.f32 %v2003_v17, %v594_v19 }
 0x117   : > { %v1441_v23 = vpop.f32.mrf.mxu1 }
 0x118   : > { %v600_v24 = vpack.c.bf16 %v599_v22, %v598_v21  ;;  %v1604_v21 = vld [vmem:[#allocation2 + $0x38] sm:$0xff]   ;;  %v1605_v22 = vld [vmem:[#allocation2 + $0x30] sm:$0xff]   ;;  %v1606_v23 = vld [vmem:[#allocation2 + $0x28] sm:$0xff]  }
 0x11a   : > { %1445 = vmatmul.mubr.msk.bf16.vlgmr.msra.gmra.mxu1 %vm602_vm3, %v600_v24  ;;  %v1607_v24 = vld [vmem:[#allocation2 + $0x20] sm:$0xff]  }
 0x11b   : > { %1449 = vmatpush3.bf16.msra.mxu1 %v665_v25  ;;  %1450 = vmatprep.mubr.msk.bf16.mxu1 %vm1797_vm0, %v1796_v0  ;;  %v1608_v25 = vld [vmem:[#allocation2 + $0x18] sm:$0xff]  }
 0x11c   : > { %1454 = vmatprep.subr.bf16.mxu1 %v1796_v0 }
 0x122   : > { %1451 = vmatmul.mubr.msk.bf16.vlgmr.msra.gmra.mxu1 %vm602_vm3, %v535_v4 }
 0x123   : > { %1456 = vmatprep.mubr.msk.bf16.mxu1 %vm1797_vm0, %v1796_v0 }
 0x1da   : > { %v644_v26 = vpop.f32.mrf.mxu1 }
 0x1db   : > { %v658_v31 = vadd.f32 %v1350_v28, %v644_v26  ;;  %v1610_v26 = vld [vmem:[#allocation2 + $0x8] sm:$0xff]  }
 0x1dc   : > { %v1446_v27 = vpop.f32.mrf.mxu1 }
 0x1dd   : > { %v1611_v27 = vld [vmem:[#allocation2] sm:$0xff]  }
 0x1de   : > { %v647_v29 = vpop.f32.mrf.mxu1 }
 0x1df   : > { %v659_v35 = vadd.f32 %v1350_v28, %v647_v29 }
 0x1e0   : > { %v1447_v30 = vpop.f32.mrf.mxu1 }
 0x1e2   : > { %v701_v32 = vpop.f32.mrf.mxu1 }
 0x1e3   : > { %v708_v33 = vadd.f32 %v701_v32, %v658_v31 }
 0x1e4   : > { %v1452_v34 = vpop.f32.mrf.mxu1 }
 0x1e5   : > { %v710_v36 = vmul.f32 %v708_v33, %v708_v33 }
 0x1e6   : > { %v704_v37 = vpop.f32.mrf.mxu1 }
 0x1e7   : > { %v709_v38 = vadd.f32 %v704_v37, %v659_v35  ;;  %712 = vadd.xlane.f32.xlu1 %v710_v36  ;;  %v1612_v35 = vld [vmem:[#allocation7 + $0x38] sm:$0xff]   ;;  %v1381_v37 = vld [vmem:[%s2118_s8] ss:$0 sm:$0xff] }
 0x1e8   : > { %v1453_v39 = vpop.f32.mrf.mxu1 }
 0x1e9   : > { %v711_v40 = vmul.f32 %v709_v38, %v709_v38 }
 0x1eb   : > { %714 = vadd.xlane.f32.xlu1 %v711_v40 }
 0x270   : > { %v713_v58 = vpop.xlane.xlu1 %712 }
 0x271   : > { %v716_v59 = vmax.f32 %v713_v58, 1e-24 }
 0x273   : > { %1625 = vrsqrt.f32 %v716_v59 }
 0x274   : > { %v715_v60 = vpop.xlane.xlu1 %714 }
 0x275   : > { %v717_v61 = vmax.f32 %v715_v60, 1e-24  ;;  %v1382_v60 = vld [vmem:[%s2119_s9] ss:$0 sm:$0xff] }
 0x277   : > { %1627 = vrsqrt.f32 %v717_v61 }
 0x280   : > { %v1626_v62 = vpop.eup %1625 }
 0x281   : > { %v720_v1 = vmul.f32 %v1626_v62, %v708_v33 }
 0x283   : > { %v729_v4 = vmul.f32 %v1352_v63, %v720_v1 }
 0x284   : > { %v1628_v5 = vpop.eup %1627 }
 0x285   : > { %v738_v6 = vadd.f32 %v1353_v2, %v729_v4  ;;  %v721_v7 = vmul.f32 %v1628_v5, %v709_v38 }
 0x287   : > { %v1354_v8 = vmul.f32 -1.442695, %v738_v6  ;;  %v730_v9 = vmul.f32 %v1352_v63, %v721_v7 }
 0x289   : > { %1629 = vpow2.f32 %v1354_v8  ;;  %v739_v10 = vadd.f32 %v1353_v2, %v730_v9 }
 0x28b   : > { %v1355_v11 = vmul.f32 -1.442695, %v739_v10 }
 0x28d   : > { %1631 = vpow2.f32 %v1355_v11 }
 0x296   : > { %v1630_v12 = vpop.eup %1629 }
 0x297   : > { %v746_v13 = vadd.f32 1.0, %v1630_v12  ;;  %v1392_v12 = vld [vmem:[%s2123_s13] ss:$0 sm:$0xff] }
 0x299   : > { %1633 = vrcp.f32 %v746_v13 }
 0x29a   : > { %v1632_v14 = vpop.eup %1631 }
 0x29b   : > { %v747_v15 = vadd.f32 1.0, %v1632_v14 }
 0x29d   : > { %1635 = vrcp.f32 %v747_v15 }
 0x2a6   : > { %v1634_v18 = vpop.eup %1633 }
 0x2aa   : > { %v1636_v19 = vpop.eup %1635 }
 0x2ab   : > { %v752_v20 = vpack.c.bf16 %v1636_v19, %v1634_v18 }
 0x2ad   : > { %1455 = vmatpush3.bf16.msra.mxu1 %v752_v20  ;;  %925 = vmatmul.mubr.bf16.vlgmr.msra.gmra.mxu0 %v752_v20 }
 0x2ae   : > { %1460 = vmatprep.subr.bf16.mxu1 %v1796_v0  ;;  %1496 = vmatprep.mubr.msk.bf16.mxu0 %vm1797_vm0, %v1796_v0 }
 0x2af   : > { %1481 = vmatpush3.bf16.msra.mxu0 %v1612_v35 }
 0x2b0   : > { %1457 = vmatmul.mubr.msk.bf16.vlgmr.msra.gmra.mxu1 %vm538_vm1, %v1985_v3  ;;  %v1609_v3 = vld [vmem:[#allocation2 + $0x10] sm:$0xff]   ;;  %1482 = vmatprep.subr.bf16.mxu0 %v1796_v0 }
 0x2b1   : > { %1461 = vmatpush3.bf16.msra.mxu1 %v1604_v21  ;;  %1476 = vmatprep.mubr.msk.bf16.mxu1 %vm1797_vm0, %v1796_v0 }
 0x2b2   : > { %1462 = vmatprep.subr.bf16.mxu1 %v1796_v0 }
 0x2b3   : > { %1483 = vmatpush3.bf16.msra.mxu0 %v1613_v48 }
 0x2b4   : > { %1484 = vmatprep.subr.bf16.mxu0 %v1796_v0 }
 0x2b5   : > { %1463 = vmatpush3.bf16.msra.mxu1 %v1605_v22 }
 0x2b6   : > { %1464 = vmatprep.subr.bf16.mxu1 %v1796_v0 }
 0x2b7   : > { %1485 = vmatpush3.bf16.msra.mxu0 %v1614_v49 }
 0x2b8   : > { %1486 = vmatprep.subr.bf16.mxu0 %v1796_v0 }
 0x2b9   : > { %1465 = vmatpush3.bf16.msra.mxu1 %v1606_v23 }
 0x2ba   : > { %1466 = vmatprep.subr.bf16.mxu1 %v1796_v0 }
 0x2bb   : > { %1487 = vmatpush3.bf16.msra.mxu0 %v1615_v50 }
 0x2bc   : > { %1488 = vmatprep.subr.bf16.mxu0 %v1796_v0 }
 0x2bd   : > { %1467 = vmatpush3.bf16.msra.mxu1 %v1607_v24 }
 0x2be   : > { %1468 = vmatprep.subr.bf16.mxu1 %v1796_v0 }
 0x2bf   : > { %1489 = vmatpush3.bf16.msra.mxu0 %v1616_v51 }
 0x2c0   : > { %1490 = vmatprep.subr.bf16.mxu0 %v1796_v0 }
 0x2c1   : > { %1469 = vmatpush3.bf16.msra.mxu1 %v1608_v25 }
 0x2c2   : > { %1470 = vmatprep.subr.bf16.mxu1 %v1796_v0 }
 0x2c3   : > { %1491 = vmatpush3.bf16.msra.mxu0 %v1617_v52 }
 0x2c4   : > { %1492 = vmatprep.subr.bf16.mxu0 %v1796_v0 }
 0x2c5   : > { %1471 = vmatpush3.bf16.msra.mxu1 %v1609_v3 }
 0x2c6   : > { %1472 = vmatprep.subr.bf16.mxu1 %v1796_v0 }
 0x2c7   : > { %1493 = vmatpush3.bf16.msra.mxu0 %v1618_v53 }
 0x2c8   : > { %1494 = vmatprep.subr.bf16.mxu0 %v1796_v0 }
 0x2c9   : > { %1473 = vmatpush3.bf16.msra.mxu1 %v1610_v26 }
 0x2ca   : > { %1474 = vmatprep.subr.bf16.mxu1 %v1796_v0  ;;  %v1383_v0 = vld [vmem:[%s2120_s10] ss:$0 sm:$0xff] }
 0x2cb   : > { %1495 = vmatpush3.bf16.msra.mxu0 %v1619_v54 }
 0x2cd   : > { %1475 = vmatpush3.bf16.msra.mxu1 %v1611_v27 }
 0x36d   : > { %v926_v36 = vpop.f32.mrf.mxu0 }
 0x36f   : > { %v928_v40 = vpop.f32.mrf.mxu0 }
 0x370   : > { %v787_v28 = vpop.f32.mrf.mxu1 }
 0x371   : > { %v794_v31 = vmul.f32 %v2001_v16, %v787_v28  ;;  %v930_v44 = vpop.f32.mrf.mxu0 }
 0x372   : > { %v1458_v29 = vpop.f32.mrf.mxu1 }
 0x373   : > { %v932_v9 = vpop.f32.mrf.mxu0 }
 0x374   : > { %v790_v30 = vpop.f32.mrf.mxu1 }
 0x375   : > { %v795_v32 = vmul.f32 %v2003_v17, %v790_v30 }
 0x376   : > { %v1459_v33 = vpop.f32.mrf.mxu1 }
 0x377   : > { %v935_v34 = vpack.c.bf16 %v795_v32, %v794_v31 }
 0x379   : > { %1477 = vmatmul.mubr.bf16.vlgmr.msra.gmra.mxu1 %v935_v34 }
 0x439   : > { %v1034_v38 = vpop.f32.mrf.mxu1 }
 0x43a   : > { %v1048_v39 = vadd.f32 %v1381_v37, %v1034_v38 }
 0x43b   : > { %v1478_v41 = vpop.f32.mrf.mxu1 }
 0x43c   : > { %v1050_v42 = vadd.f32 %v1048_v39, %v926_v36 }
 0x43d   : > { %v1037_v16 = vpop.f32.mrf.mxu1 }
 0x43e   : > { %v1049_v43 = vadd.f32 %v1381_v37, %v1037_v16  ;;  %v1052_v17 = vmul.f32 %v1050_v42, %v1050_v42 }
 0x43f   : > { %v1479_v45 = vpop.f32.mrf.mxu1 }
 0x440   : > { %v1051_v46 = vadd.f32 %v1049_v43, %v930_v44  ;;  %1054 = vadd.xlane.f32.xlu0 %v1052_v17 }
 0x442   : > { %v1053_v47 = vmul.f32 %v1051_v46, %v1051_v46 }
 0x444   : > { %1056 = vadd.xlane.f32.xlu1 %v1053_v47 }
 0x4c9   : > { %v1055_v55 = vpop.xlane.xlu0 %1054 }
 0x4ca   : > { %v1058_v56 = vmax.f32 %v1055_v55, 1e-24 }
 0x4cc   : > { %1637 = vrsqrt.f32 %v1058_v56 }
 0x4cd   : > { %v1057_v57 = vpop.xlane.xlu1 %1056 }
 0x4ce   : > { %v1059_v58 = vmax.f32 %v1057_v57, 1e-24 }
 0x4d0   : > { %1639 = vrsqrt.f32 %v1059_v58 }
 0x4d9   : > { %v1638_v59 = vpop.eup %1637 }
 0x4da   : > { %v1062_v61 = vmul.f32 %v1638_v59, %v1050_v42 }
 0x4dc   : > { %v1071_v62 = vmul.f32 %v1382_v60, %v1062_v61 }
 0x4dd   : > { %v1640_v63 = vpop.eup %1639 }
 0x4de   : > { %v1063_v1 = vmul.f32 %v1640_v63, %v1051_v46  ;;  %v1080_v4 = vadd.f32 %v1383_v0, %v1071_v62 }
 0x4e0   : > { %v1072_v2 = vmul.f32 %v1382_v60, %v1063_v1  ;;  %v1082_v6 = vmax.f32 %v1080_v4, 0.0 }
 0x4e2   : > { %v1081_v5 = vadd.f32 %v1383_v0, %v1072_v2 }
 0x4e4   : > { %v1083_v7 = vmax.f32 %v1081_v5, 0.0 }
 0x4e6   : > { %v1084_v8 = vpack.c.bf16 %v1083_v7, %v1082_v6 }
 0x4e8   : > { %1497 = vmatmul.mubr.bf16.vlgmr.msra.gmra.mxu0 %v1084_v8 }
 0x5a8   : > { %v1183_v10 = vpop.f32.mrf.mxu0 }
 0x5a9   : > { %v1190_v11 = vadd.f32 %v1183_v10, %v928_v40 }
 0x5aa   : > { %v1498_v13 = vpop.f32.mrf.mxu0 }
 0x5ab   : > { %v1199_v15 = vadd.f32 %v1392_v12, %v1190_v11 }
 0x5ac   : > { %v1186_v14 = vpop.f32.mrf.mxu0 }
 0x5ad   : > { %v1191_v18 = vadd.f32 %v1186_v14, %v932_v9  ;;  %v1201_v21 = vmax.f32 %v1199_v15, 0.0 }
 0x5ae   : > { %v1499_v19 = vpop.f32.mrf.mxu0 }
 0x5af   : > { %v1200_v20 = vadd.f32 %v1392_v12, %v1191_v18 }
 0x5b1   : > { %v1202_v22 = vmax.f32 %v1200_v20, 0.0 }
 0x5b3   : > { %v1408_v23 = vpack.c.bf16 %v1202_v22, %v1201_v21 }
 0x5b5   : > { %1409 = vst [vmem:[%s519_s28] sm:$0xff] %v1408_v23  }
 0x5b6   : > { %1732 = shalt.err (!%p1729_p11)
}
 0x5b7   : > { %s1733_s26 = scalar_lea.hbm %s2066_s15, 128  ;;  %s1737_s25 = scalar_lea.hbm %s2124_s14, 256 }
 0x5b8   : > { %p1734_p0 = scmp.ne.s32.totalorder %s2066_s15, %s1733_s26  ;;  %p1738_p3 = scmp.lt.s32.totalorder %s2066_s15, %s2124_s14 }
 0x5b9   : > { %p1739_p2 = scmp.lt.s32.totalorder %s1737_s25, %s1733_s26 }
 0x5ba   : > { %p1735_p1 = pnand %p1734_p0, %p1915_p5 }
 0x5bb   : > { %p1740_p4 = por %p1739_p2, %p1738_p3 }
 0x5bc   : > { %p1736_p13 = pneg %p1735_p1 }
 0x5be   : > { %p1741_p10 = pnand %p1740_p4, %p1736_p13 }
 0x5c0   : > { %1744 = shalt.err (!%p1741_p10)
}
 0x5c1   : > { %s1800_s21 = smov 64   ;;  %s1801_s27 = smov 4  }
 0x5c2   : > { %1512 = dma.vmem_to_hbm [thread:$0]  (%p1915_p5), %s2068_s20, 128, %s2066_s15, %s2070_s22, %s1800_s21, %s1800_s21, %s1801_s27  }
 0x5c3 PF: > { %s2146_s17 = sld [smem:[#allocation14_spill]] }
 0x5c4   : > { %s2147_s19 = sld [smem:[#allocation12_spill]] }
 0x5c5   : > { %s2148_s29 = sld [smem:[#allocation17_spill]] }
 0x5c9   : > { %p1534_p12 = scmp.ge.s32.totalorder %s2146_s17, 2 }
 0x5ca   : > { %s1242_s16 = sand.u32 1, %s2147_s19  }
 0x5cb   : > { %p2149_p7 = scmp.ne.s32.totalorder %s2148_s29, 0  ;;  %s1243_s26 = scalar_lea.sflag [#allocation4], %s1242_s16 }
 0x5cd   : > { %p1525_p6 = pnand %p1534_p12, %p2149_p7 }
 0x5cf   : > { %p1526_p9 = pneg %p1525_p6 }
 0x5d1   : > { %1770 = dma.done.wait (%p1526_p9), %s1243_s26, 128  }
 0x5d2   : > { %1772 = vsyncadd (%p1526_p9), %s1243_s26, 4294967168  ;;  %s2150_s16 = sld [smem:[#allocation15_spill]]  ;;  %s2153_s29 = smov %s1779_s30 }
 0x5d3   : > { %s2151_s24 = sld [smem:[#allocation13_spill]] }
 0x5d4   : > { %s2152_s15 = sld [smem:[#allocation16_spill]] }
 0x5d8   : > { %p26_p8 = scmp.ge.s32.totalorder %s2150_s16, 4  }
 0x5d9   : > { %s2154_s30 = smov %s2151_s24 }
 0x5da   :  { %28 = sbr.rel (!%p26_p8) target bundleno = 5 (0x5), region = 127 }
 0x5df   :  { %1248 = vsyncpa [#allocation3], 1 }
 0x5e0   :  { %1250 = vsyncpa [#allocation3 + $0x1], 1 }
 0x5e1   :  { %1251 = vsyncpa [#allocation6], 1 }
 0x5e2   :  { %1252 = vsyncpa [#allocation4], 1 }
 0x5e3   :  { %1254 = vsyncpa [#allocation4 + $0x1], 1 }

</bundles_post_ra>
